<compile_context>
chip_gen: v6e
topology: v6e:2x2x1
jax: 0.10.0
libtpu: 0.0.40
codegen_flags: <defaults>
</compile_context>

<pallas_src>
import functools

import jax
import jax.numpy as jnp
from jax.experimental import pallas as pl
from jax.experimental.pallas import tpu as pltpu


def _round_up(a, b):
    return -(-a // b) * b


# ---------------------------------------------------------------------------
# Hardware / feature probes
# ---------------------------------------------------------------------------

def _hw_params():
    """(usable VMEM bytes, TensorCores per chip) with conservative fallbacks."""
    vmem_cap = 64 * 1024 * 1024
    num_cores = 1
    try:
        info = pltpu.get_tpu_info()
        vmem_cap = int(getattr(info, "vmem_capacity_bytes", vmem_cap) or vmem_cap)
        for name in ("num_cores", "tensorcores_per_chip", "num_tensorcores", "cores_per_chip"):
            val = getattr(info, name, None)
            if val:
                num_cores = int(val)
                break
    except Exception:  # no TPU info available -> conservative defaults
        pass
    usable = vmem_cap - vmem_cap // 8          # leave ~12.5% compiler headroom
    return usable, max(1, num_cores)


_SINGLE_BUFFER_OK = None


def _probe_kernel(x_ref, o_ref):
    o_ref[...] = x_ref[...] + 1.0


def _single_buffer_supported():
    """True iff BlockSpec(pipeline_mode=pl.Buffered(1)) compiles & runs on this JAX/TPU."""
    global _SINGLE_BUFFER_OK
    if _SINGLE_BUFFER_OK is None:
        try:
            fn = pl.pallas_call(
                _probe_kernel,
                out_shape=jax.ShapeDtypeStruct((16, 128), jnp.float32),
                grid=(2,),
                in_specs=[pl.BlockSpec((8, 128), lambda i: (0, 0),
                                       pipeline_mode=pl.Buffered(1))],
                out_specs=pl.BlockSpec((8, 128), lambda i: (i, 0)),
            )
            jax.block_until_ready(fn(jnp.zeros((16, 128), jnp.float32)))
            _SINGLE_BUFFER_OK = True
        except Exception:
            _SINGLE_BUFFER_OK = False
    return _SINGLE_BUFFER_OK


def _resident_spec(shape, single_buffer):
    """Whole-array block with a constant index map (stays VMEM-resident across the grid)."""
    ndim = len(shape)
    index_map = lambda i, j: (0,) * ndim
    if single_buffer:
        return pl.BlockSpec(shape, index_map, pipeline_mode=pl.Buffered(1))
    return pl.BlockSpec(shape, index_map)


# ---------------------------------------------------------------------------
# Tiling heuristics
# ---------------------------------------------------------------------------

def _choose_batch_tile(B, max_tile, D, num_cores, usable_vmem):
    B8 = _round_up(B, 8)
    bt = max(8, min(max_tile // 8 * 8, B8))
    # keep >= 2 batch grid steps when possible: v7x splits the "parallel" axis across its
    # 2 TensorCores, and on 1-TC chips a second step lets the x DMA overlap compute.
    steps = max(num_cores, 2) if B8 >= 16 else 1
    bt = min(bt, max(8, _round_up(-(-B8 // steps), 8)))
    # cap so the double-buffered f32 x tile (+ its bf16 copy) stays under ~1/3 of VMEM.
    vmem_cap_rows = (usable_vmem // 3) // (10 * D)
    bt = min(bt, max(8, vmem_cap_rows // 8 * 8))
    # keep batch padding below ~12.5% of B (padded rows waste full fc1/fc2 FLOPs + DMA).
    while bt > 8 and (_round_up(B, bt) - B) * 8 > B:
        bt -= 8
    return bt


# ---------------------------------------------------------------------------
# Kernel
# ---------------------------------------------------------------------------

def _fc_with_dropout_kernel(x_ref, w1_ref, b1_ref, w2_ref, b2_ref, w34_ref, b34_ref,
                            o_ref, acc_ref):
    """Grid = (batch tiles, fc1-output-column tiles). acc_ref accumulates fc2 pre-activations."""
    j = pl.program_id(1)

    @pl.when(j == 0)
    def _():
        acc_ref[...] = jnp.zeros_like(acc_ref)

    x = x_ref[...].astype(jnp.bfloat16)

    # fc1 (this column block) + ReLU.  dropout1: eval-mode identity.
    # TODO(synk): training-mode dropout (p=0.5) would need pltpu.prng_seed/prng_random_bits masking.
    h1 = jnp.dot(x, w1_ref[...], preferred_element_type=jnp.float32) + b1_ref[...]
    h1 = jnp.maximum(h1, 0.0)

    # Partial fc2: this fc1-column block's contribution (exact: ReLU is elementwise per column).
    acc_ref[...] += jnp.dot(h1.astype(jnp.bfloat16), w2_ref[...],
                            preferred_element_type=jnp.float32)

    @pl.when(j == pl.num_programs(1) - 1)
    def _():
        # fc2 bias + ReLU (dropout2: identity), then fused fc3 @ fc4.
        h2 = jnp.maximum(acc_ref[...] + b2_ref[...], 0.0)
        out = jnp.dot(h2.astype(jnp.bfloat16), w34_ref[...],
                      preferred_element_type=jnp.float32) + b34_ref[...]
        o_ref[...] = out.astype(o_ref.dtype)


# ---------------------------------------------------------------------------
# Wrapper
# ---------------------------------------------------------------------------

@functools.partial(jax.jit, static_argnames=("batch_tile", "single_buffer"))
def _forward_impl(x, params, *, batch_tile, single_buffer):
    B, D = x.shape
    D4 = D // 4
    N1 = D                                    # fc1 output features

    # bf16 MXU weights (f32 accumulation); exact algebraic fusion of fc3 @ fc4 (done in f32).
    w1 = params["w1"].astype(jnp.bfloat16)                                   # (D,  N1)
    w2 = params["w2"].astype(jnp.bfloat16)                                   # (N1, D4)
    w34 = (params["w3"] @ params["w4"]).astype(jnp.bfloat16)                 # (D4, 4)
    b1 = params["b1"].astype(jnp.float32)                                    # (1, N1)
    b2 = params["b2"].astype(jnp.float32)                                    # (1, D4)
    b34 = (params["b3"] @ params["w4"] + params["b4"]).astype(jnp.float32)   # (1, 4)

    usable_vmem, num_cores = _hw_params()

    # --- batch tiling ---------------------------------------------------------------
    bt = _choose_batch_tile(B, batch_tile, D, num_cores, usable_vmem)
    Bp = _round_up(B, bt)
    if Bp != B:
        x = jnp.pad(x, ((0, Bp - B), (0, 0)))

    # --- VMEM budget (includes live intermediates, not just tiles) -------------------
    resident_small = (1 if single_buffer else 2) * (w34.size * 2 + b2.size * 4 + b34.size * 4)
    base_bytes = (2 * bt * D * 4          # x tile (f32, double-buffered)
                  + bt * D * 2            # in-kernel bf16 copy of x
                  + 2 * bt * 4 * 4        # output tile
                  + bt * D4 * 4           # fc2 accumulator scratch
                  + bt * D4 * 6           # h2 f32 + bf16 copy
                  + resident_small
                  + (4 << 20))            # misc / compiler scratch headroom
    per_col = 2 * D + 4 + 2 * D4          # bf16 w1 column + f32 b1 entry + bf16 w2 row
    resident_w_factor = 1 if single_buffer else 2

    if base_bytes + N1 * (resident_w_factor * per_col + bt * 6) <= usable_vmem:
        tn, n1 = N1, 1                    # weights fully VMEM-resident, fetched once for the grid
    else:
        # Large D (e.g. v7x's 64 MiB VMEM): stream fc1-output-column blocks of w1/b1/w2.
        tn = (usable_vmem - base_bytes) // (2 * per_col + bt * 6)
        tn = max(128, int(tn) // 128 * 128)
        n1 = pl.cdiv(N1, tn)

    N1p = n1 * tn
    if N1p != N1:                          # zero-pad fc1 output features (exact: relu(0) @ 0 == 0)
        w1 = jnp.pad(w1, ((0, 0), (0, N1p - N1)))
        b1 = jnp.pad(b1, ((0, 0), (0, N1p - N1)))
        w2 = jnp.pad(w2, ((0, N1p - N1), (0, 0)))

    if n1 == 1:
        w1_spec = _resident_spec(w1.shape, single_buffer)
        b1_spec = _resident_spec(b1.shape, single_buffer)
        w2_spec = _resident_spec(w2.shape, single_buffer)
        streamed = False
    else:
        w1_spec = pl.BlockSpec((D, tn), lambda i, j: (0, j))
        b1_spec = pl.BlockSpec((1, tn), lambda i, j: (0, j))
        w2_spec = pl.BlockSpec((tn, D4), lambda i, j: (j, 0))
        streamed = True

    needed = base_bytes + tn * ((2 if streamed else resident_w_factor) * per_col + bt * 6)
    vmem_limit = int(min(max(needed, 32 << 20), usable_vmem))

    weight_bytes = (w1.size + w2.size + w34.size) * 2 + (b1.size + b2.size + b34.size) * 4
    flops = 2 * Bp * (D * N1p + N1p * D4 + D4 * 4)
    bytes_accessed = (Bp * D * 4 + Bp * 4 * 4
                      + weight_bytes * ((Bp // bt) if streamed else 1))

    out = pl.pallas_call(
        _fc_with_dropout_kernel,
        out_shape=jax.ShapeDtypeStruct((Bp, 4), jnp.float32),
        grid_spec=pltpu.PrefetchScalarGridSpec(
            num_scalar_prefetch=0,
            grid=(Bp // bt, n1),
            in_specs=[
                pl.BlockSpec((bt, D), lambda i, j: (i, 0)),   # x tile (streamed over batch)
                w1_spec, b1_spec, w2_spec,
                _resident_spec(b2.shape, single_buffer),
                _resident_spec(w34.shape, single_buffer),
                _resident_spec(b34.shape, single_buffer),
            ],
            out_specs=pl.BlockSpec((bt, 4), lambda i, j: (i, 0)),
            scratch_shapes=[pltpu.VMEM((bt, D4), jnp.float32)],   # fc2 accumulator
        ),
        compiler_params=pltpu.CompilerParams(
            dimension_semantics=("parallel", "arbitrary"),   # batch axis shards across v7x's 2 TCs
            vmem_limit_bytes=vmem_limit,
        ),
        cost_estimate=pl.CostEstimate(flops=flops, transcendentals=0,
                                      bytes_accessed=bytes_accessed),
    )(x, w1, b1, w2, b2, w34, b34)

    return out[:B] if Bp != B else out


def fc_with_dropout_forward(x, params, *, batch_tile=1024):
    """Eval-mode FcWithDropout forward. x: (B, D) float32; params: transposed weights (in, out)."""
    return _forward_impl(x, params, batch_tile=int(batch_tile),
                         single_buffer=_single_buffer_supported())


# ---------------------------------------------------------------------------
# Parameter init + pure-JAX reference
# ---------------------------------------------------------------------------

def _orthogonal(key, out_dim, in_dim, scale=1.0, dtype=jnp.float32):
    """Deterministic orthogonal init (mirrors nn.init.orthogonal_ semantics)."""
    n, m = max(out_dim, in_dim), min(out_dim, in_dim)
    a = jax.random.normal(key, (n, m), dtype=jnp.float32)
    q, r = jnp.linalg.qr(a)
    q = q * jnp.sign(jnp.diag(r))
    if out_dim < in_dim:
        q = q.T
    return (scale * q[:out_dim, :in_dim]).astype(dtype)


def init_params(key, input_dim, init_scale=1.0):
    """Module parameters, pre-transposed to (in, out); biases as (1, out). All float32."""
    d, d4 = input_dim, input_dim // 4
    k1, k2, k3, k4w, k4b = jax.random.split(key, 5)

    # fc1..fc3: orthogonal weights, zero biases (as in the module's __init__)
    w1 = _orthogonal(k1, d, d, init_scale)       # torch shape (out=d,  in=d)
    w2 = _orthogonal(k2, d4, d, init_scale)      # (d4, d)
    w3 = _orthogonal(k3, d4, d4, init_scale)     # (d4, d4)

    # fc4: PyTorch default Linear init: U(-1/sqrt(fan_in), 1/sqrt(fan_in)), fan_in = d4
    bound4 = 1.0 / float(d4) ** 0.5
    w4 = jax.random.uniform(k4w, (4, d4), jnp.float32, -bound4, bound4)
    b4 = jax.random.uniform(k4b, (1, 4), jnp.float32, -bound4, bound4)

    return {
        "w1": w1.T, "b1": jnp.zeros((1, d), jnp.float32),
        "w2": w2.T, "b2": jnp.zeros((1, d4), jnp.float32),
        "w3": w3.T, "b3": jnp.zeros((1, d4), jnp.float32),
        "w4": w4.T, "b4": b4,
    }


def reference_forward(x, params):
    """Pure-JAX f32 reference of the eval-mode forward pass (unfused fc3/fc4)."""
    h = jnp.maximum(x @ params["w1"] + params["b1"], 0.0)
    h = jnp.maximum(h @ params["w2"] + params["b2"], 0.0)
    h = h @ params["w3"] + params["b3"]
    return h @ params["w4"] + params["b4"]


if __name__ == "__main__":
    INPUT_DIM = 512        # hidden width for fc2/fc3 = 128 (input_dim must be divisible by 4)
    BATCH = 256

    key = jax.random.PRNGKey(0)
    kx, kp = jax.random.split(key)

    x = jax.random.normal(kx, (BATCH, INPUT_DIM), jnp.float32)
    params = init_params(kp, INPUT_DIM, init_scale=1.0)

    out = jax.block_until_ready(fc_with_dropout_forward(x, params))
    ref = reference_forward(x, params)
    assert out.shape == (BATCH, 4), out.shape
    # bf16 matmul inputs (f32 accumulation) + exact fc3/fc4 fusion -> small rounding delta vs f32 ref
    max_err = float(jnp.max(jnp.abs(out - ref)))
    assert max_err < 5e-2, max_err

    # Ragged batch exercises the padding / tile-clamp path.
    x2 = x[:52]
    out2 = jax.block_until_ready(fc_with_dropout_forward(x2, params))
    assert out2.shape == (52, 4), out2.shape
    max_err2 = float(jnp.max(jnp.abs(out2 - reference_forward(x2, params))))
    assert max_err2 < 5e-2, max_err2

    print("KERNEL_OK")
</pallas_src>

<mosaic_0001>
module attributes {stable_mosaic.version = 11 : i64} {
  func.func @_probe_kernel(%arg0: i32, %arg1: memref<8x128xf32, #tpu.memory_space<vmem>>, %arg2: memref<8x128xf32, #tpu.memory_space<vmem>>) attributes {dimension_semantics = [#tpu.dimension_semantics<arbitrary>], iteration_bounds = array<i64: 2>, scalar_prefetch = 0 : i64, scratch_operands = 0 : i64, tpu.core_type = #tpu.core_type<tc>, window_params = [{pipeline_mode = #tpu.pipeline_mode<synchronous>, transform_indices = @transform_0, window_bounds = array<i64: 8, 128>}, {transform_indices = @transform_1, window_bounds = array<i64: 8, 128>}]} {
    %c0 = arith.constant 0 : index
    %c0_0 = arith.constant 0 : index
    %0 = vector.load %arg1[%c0, %c0_0] : memref<8x128xf32, #tpu.memory_space<vmem>>, vector<8x128xf32>
    %cst = arith.constant 1.000000e+00 : f32
    %1 = vector.broadcast %cst : f32 to vector<8x128xf32>
    %2 = arith.addf %0, %1 : vector<8x128xf32>
    %c0_1 = arith.constant 0 : index
    %c0_2 = arith.constant 0 : index
    %3 = vector.load %arg2[%c0_1, %c0_2] : memref<8x128xf32, #tpu.memory_space<vmem>>, vector<8x128xf32>
    tpu.vector_store %arg2[%c0_1, %c0_2], %2 {strides = array<i32>} : memref<8x128xf32, #tpu.memory_space<vmem>>, vector<8x128xf32>,
    return
  }
  func.func @transform_0(%arg0: i32) -> (i32, i32) {
    %c0_i32 = arith.constant 0 : i32
    %c0_i32_0 = arith.constant 0 : i32
    %c0_i32_1 = arith.constant 0 : i32
    return %c0_i32, %c0_i32_0 : i32, i32
  }
  func.func @transform_1(%arg0: i32) -> (i32, i32) {
    %c0_i32 = arith.constant 0 : i32
    %c0_i32_0 = arith.constant 0 : i32
    return %arg0, %c0_i32 : i32, i32
  }
}

module attributes {stable_mosaic.version = 11 : i64} {
  func.func @_fc_with_dropout_kernel(%arg0: i32, %arg1: i32, %arg2: memref<128x512xf32, #tpu.memory_space<vmem>>, %arg3: memref<512x512xbf16, #tpu.memory_space<vmem>>, %arg4: memref<1x512xf32, #tpu.memory_space<vmem>>, %arg5: memref<512x128xbf16, #tpu.memory_space<vmem>>, %arg6: memref<1x128xf32, #tpu.memory_space<vmem>>, %arg7: memref<128x4xbf16, #tpu.memory_space<vmem>>, %arg8: memref<1x4xf32, #tpu.memory_space<vmem>>, %arg9: memref<128x4xf32, #tpu.memory_space<vmem>>, %arg10: memref<128x128xf32, #tpu.memory_space<vmem>>) attributes {dimension_semantics = [#tpu.dimension_semantics<parallel>, #tpu.dimension_semantics<arbitrary>], iteration_bounds = array<i64: 2, 1>, scalar_prefetch = 0 : i64, scratch_operands = 1 : i64, tpu.core_type = #tpu.core_type<tc>, window_params = [{transform_indices = @transform_0, window_bounds = array<i64: 128, 512>}, {pipeline_mode = #tpu.pipeline_mode<synchronous>, transform_indices = @transform_1, window_bounds = array<i64: 512, 512>}, {pipeline_mode = #tpu.pipeline_mode<synchronous>, transform_indices = @transform_2, window_bounds = array<i64: 1, 512>}, {pipeline_mode = #tpu.pipeline_mode<synchronous>, transform_indices = @transform_3, window_bounds = array<i64: 512, 128>}, {pipeline_mode = #tpu.pipeline_mode<synchronous>, transform_indices = @transform_4, window_bounds = array<i64: 1, 128>}, {pipeline_mode = #tpu.pipeline_mode<synchronous>, transform_indices = @transform_5, window_bounds = array<i64: 128, 4>}, {pipeline_mode = #tpu.pipeline_mode<synchronous>, transform_indices = @transform_6, window_bounds = array<i64: 1, 4>}, {transform_indices = @transform_7, window_bounds = array<i64: 128, 4>}]} {
    %c0_i32 = arith.constant 0 : i32
    %0 = arith.cmpi eq, %arg1, %c0_i32 : i32
    %1 = arith.extui %0 : i1 to i32
    %c0_i32_0 = arith.constant 0 : i32
    %2 = arith.cmpi ne, %1, %c0_i32_0 : i32
    scf.if %2 {
      %cst_16 = arith.constant 0.000000e+00 : f32
      %21 = vector.broadcast %cst_16 : f32 to vector<128x128xf32>
      %c0_17 = arith.constant 0 : index
      %c0_18 = arith.constant 0 : index
      %22 = vector.load %arg10[%c0_17, %c0_18] : memref<128x128xf32, #tpu.memory_space<vmem>>, vector<128x128xf32>
      tpu.vector_store %arg10[%c0_17, %c0_18], %21 {strides = array<i32>} : memref<128x128xf32, #tpu.memory_space<vmem>>, vector<128x128xf32>,
    } else {
    }
    %c0 = arith.constant 0 : index
    %c0_1 = arith.constant 0 : index
    %3 = vector.load %arg2[%c0, %c0_1] : memref<128x512xf32, #tpu.memory_space<vmem>>, vector<128x512xf32>
    %4 = arith.truncf %3 : vector<128x512xf32> to vector<128x512xbf16>
    %c0_2 = arith.constant 0 : index
    %c0_3 = arith.constant 0 : index
    %5 = vector.load %arg3[%c0_2, %c0_3] : memref<512x512xbf16, #tpu.memory_space<vmem>>, vector<512x512xbf16>
    %cst = arith.constant dense<0.000000e+00> : vector<128x512xf32>
    %6 = tpu.matmul %4, %5, %cst {dimension_numbers = #tpu.dot_dimension_numbers<[1], [0], [0], [1], [0, 0, 1, 1], [], []>} : vector<128x512xbf16>, vector<512x512xbf16>, vector<128x512xf32> -> vector<128x512xf32>
    %c0_4 = arith.constant 0 : index
    %c0_5 = arith.constant 0 : index
    %7 = vector.load %arg4[%c0_4, %c0_5] : memref<1x512xf32, #tpu.memory_space<vmem>>, vector<1x512xf32>
    %8 = vector.broadcast %7 : vector<1x512xf32> to vector<128x512xf32>
    %9 = arith.addf %6, %8 : vector<128x512xf32>
    %cst_6 = arith.constant 0.000000e+00 : f32
    %10 = vector.broadcast %cst_6 : f32 to vector<128x512xf32>
    %11 = arith.maximumf %9, %10 : vector<128x512xf32>
    %c0_7 = arith.constant 0 : index
    %c0_8 = arith.constant 0 : index
    %12 = vector.load %arg10[%c0_7, %c0_8] : memref<128x128xf32, #tpu.memory_space<vmem>>, vector<128x128xf32>
    %13 = arith.truncf %11 : vector<128x512xf32> to vector<128x512xbf16>
    %c0_9 = arith.constant 0 : index
    %c0_10 = arith.constant 0 : index
    %14 = vector.load %arg5[%c0_9, %c0_10] : memref<512x128xbf16, #tpu.memory_space<vmem>>, vector<512x128xbf16>
    %cst_11 = arith.constant dense<0.000000e+00> : vector<128x128xf32>
    %15 = tpu.matmul %13, %14, %cst_11 {dimension_numbers = #tpu.dot_dimension_numbers<[1], [0], [0], [1], [0, 0, 1, 1], [], []>} : vector<128x512xbf16>, vector<512x128xbf16>, vector<128x128xf32> -> vector<128x128xf32>
    %16 = arith.addf %12, %15 : vector<128x128xf32>
    %c0_12 = arith.constant 0 : index
    %c0_13 = arith.constant 0 : index
    %17 = vector.load %arg10[%c0_12, %c0_13] : memref<128x128xf32, #tpu.memory_space<vmem>>, vector<128x128xf32>
    tpu.vector_store %arg10[%c0_12, %c0_13], %16 {strides = array<i32>} : memref<128x128xf32, #tpu.memory_space<vmem>>, vector<128x128xf32>,
    %c0_i32_14 = arith.constant 0 : i32
    %18 = arith.cmpi eq, %arg1, %c0_i32_14 : i32
    %19 = arith.extui %18 : i1 to i32
    %c0_i32_15 = arith.constant 0 : i32
    %20 = arith.cmpi ne, %19, %c0_i32_15 : i32
    scf.if %20 {
      %c0_16 = arith.constant 0 : index
      %c0_17 = arith.constant 0 : index
      %21 = vector.load %arg10[%c0_16, %c0_17] : memref<128x128xf32, #tpu.memory_space<vmem>>, vector<128x128xf32>
      %c0_18 = arith.constant 0 : index
      %c0_19 = arith.constant 0 : index
      %22 = vector.load %arg6[%c0_18, %c0_19] : memref<1x128xf32, #tpu.memory_space<vmem>>, vector<1x128xf32>
      %23 = vector.broadcast %22 : vector<1x128xf32> to vector<128x128xf32>
      %24 = arith.addf %21, %23 : vector<128x128xf32>
      %cst_20 = arith.constant 0.000000e+00 : f32
      %25 = vector.broadcast %cst_20 : f32 to vector<128x128xf32>
      %26 = arith.maximumf %24, %25 : vector<128x128xf32>
      %27 = arith.truncf %26 : vector<128x128xf32> to vector<128x128xbf16>
      %c0_21 = arith.constant 0 : index
      %c0_22 = arith.constant 0 : index
      %28 = vector.load %arg7[%c0_21, %c0_22] : memref<128x4xbf16, #tpu.memory_space<vmem>>, vector<128x4xbf16>
      %cst_23 = arith.constant dense<0.000000e+00> : vector<128x4xf32>
      %29 = tpu.matmul %27, %28, %cst_23 {dimension_numbers = #tpu.dot_dimension_numbers<[1], [0], [0], [1], [0, 0, 1, 1], [], []>} : vector<128x128xbf16>, vector<128x4xbf16>, vector<128x4xf32> -> vector<128x4xf32>
      %c0_24 = arith.constant 0 : index
      %c0_25 = arith.constant 0 : index
      %30 = vector.load %arg8[%c0_24, %c0_25] : memref<1x4xf32, #tpu.memory_space<vmem>>, vector<1x4xf32>
      %31 = vector.broadcast %30 : vector<1x4xf32> to vector<128x4xf32>
      %32 = arith.addf %29, %31 : vector<128x4xf32>
      %c0_26 = arith.constant 0 : index
      %c0_27 = arith.constant 0 : index
      %33 = vector.load %arg9[%c0_26, %c0_27] : memref<128x4xf32, #tpu.memory_space<vmem>>, vector<128x4xf32>
      tpu.vector_store %arg9[%c0_26, %c0_27], %32 {strides = array<i32>} : memref<128x4xf32, #tpu.memory_space<vmem>>, vector<128x4xf32>,
    } else {
    }
    return
  }
  func.func @transform_0(%arg0: i32, %arg1: i32) -> (i32, i32) {
    %c0_i32 = arith.constant 0 : i32
    %c0_i32_0 = arith.constant 0 : i32
    return %arg0, %c0_i32 : i32, i32
  }
  func.func @transform_1(%arg0: i32, %arg1: i32) -> (i32, i32) {
    %c0_i32 = arith.constant 0 : i32
    %c0_i32_0 = arith.constant 0 : i32
    %c0_i32_1 = arith.constant 0 : i32
    return %c0_i32, %c0_i32_0 : i32, i32
  }
  func.func @transform_2(%arg0: i32, %arg1: i32) -> (i32, i32) {
    %c0_i32 = arith.constant 0 : i32
    %c0_i32_0 = arith.constant 0 : i32
    %c0_i32_1 = arith.constant 0 : i32
    return %c0_i32, %c0_i32_0 : i32, i32
  }
  func.func @transform_3(%arg0: i32, %arg1: i32) -> (i32, i32) {
    %c0_i32 = arith.constant 0 : i32
    %c0_i32_0 = arith.constant 0 : i32
    %c0_i32_1 = arith.constant 0 : i32
    return %c0_i32, %c0_i32_0 : i32, i32
  }
  func.func @transform_4(%arg0: i32, %arg1: i32) -> (i32, i32) {
    %c0_i32 = arith.constant 0 : i32
    %c0_i32_0 = arith.constant 0 : i32
    %c0_i32_1 = arith.constant 0 : i32
    return %c0_i32, %c0_i32_0 : i32, i32
  }
  func.func @transform_5(%arg0: i32, %arg1: i32) -> (i32, i32) {
    %c0_i32 = arith.constant 0 : i32
    %c0_i32_0 = arith.constant 0 : i32
    %c0_i32_1 = arith.constant 0 : i32
    return %c0_i32, %c0_i32_0 : i32, i32
  }
  func.func @transform_6(%arg0: i32, %arg1: i32) -> (i32, i32) {
    %c0_i32 = arith.constant 0 : i32
    %c0_i32_0 = arith.constant 0 : i32
    %c0_i32_1 = arith.constant 0 : i32
    return %c0_i32, %c0_i32_0 : i32, i32
  }
  func.func @transform_7(%arg0: i32, %arg1: i32) -> (i32, i32) {
    %c0_i32 = arith.constant 0 : i32
    %c0_i32_0 = arith.constant 0 : i32
    return %arg0, %c0_i32 : i32, i32
  }
}

</mosaic_0001>

<bundles_post_ra>
// kernel: tpu_custom_call.1
= control target key start
LH: loop header
LB: loop body
LE: loop exit
PB: predicated region body
PF: predicated region fallthrough
CT: control target
= control target key end

     0   :  { %6 = vsyncpa [#allocation3], 0  ;;  %s448_s0 = inlined_call_operand.hbm [shape: f32[16,128], index: 0, kind: input, shape index: {}]   ;;  %s449_s1 = inlined_call_operand.hbm [shape: f32[16,128], index: 1, kind: output, shape index: {}]  }
   0x1   :  { %7 = vsyncpa [#allocation4], 0 }
   0x2   :  { %9 = vsyncpa [#allocation4 + $0x1], 0  ;;  %s348_s6 = smov 0   ;;  %s350_s7 = smov 0  }
   0x3   :  { %s352_s8 = smov 0   ;;  %s354_s9 = smov 0  }
   0x4 LB: > { %s369_s10 = sadd.s32 4294967295, %s334_s9   ;;  %s184_s11 = sadd.s32 4294967294, %s334_s9   ;;  %s334_s9 = sphi %s354_s9, %s457_s9   ;;  %s330_s8 = sphi %s352_s8, %s456_s8   ;;  %s326_s7 = sphi %s350_s7, %s455_s7   ;;  %s322_s6 = sphi %s348_s6, %s454_s6  }
   0x5   : > { %s373_s12 = sadd.s32 1, %s334_s9   ;;  %s43_s13 = sadd.s32 1, %s330_s8 }
   0x6   : > { %s40_s14 = ssub.s32 %s334_s9, %s373_s12  ;;  %p53_p0 = scmp.ne.s32.totalorder %s330_s8, %s326_s7 }
   0x7   : > { %p41_p1 = scmp.eq.s32.totalorder %s40_s14, 0  ;;  %p54_p2 = scmp.eq.s32.totalorder %s369_s10, 1 }
   0x8   : > { %p59_p3 = scmp.ne.s32.totalorder %s326_s7, %s322_s6  ;;  %p60_p4 = scmp.eq.s32.totalorder %s184_s11, 1 }
   0x9   : > { %s384_s15 = scalar_select %p41_p1, %s330_s8, %s43_s13  }
   0xa   : > { %p386_p5 = por %p54_p2, %p53_p0  ;;  %p390_p6 = por %p60_p4, %p59_p3 }
   0xb   : > { %p185_p7 = scmp.ge.s32.totalorder %s334_s9, 1  ;;  %p67_p8 = scmp.lt.s32.totalorder %s334_s9, 3 }
   0xc   : > { %s451_s17 = scalar_select %p390_p6, 1, 0 }
   0xd   : > { %p208_p9 = scmp.eq.s32.totalorder %s369_s10, 0  ;;  %p397_p10 = pnand %p185_p7, %p67_p8 }
   0xe   : > { %s336_s19 = smov [#allocation2]  }
   0xf   : > { %s80_s20 = sshll.u32 %s336_s19, 4  ;;  %p200_p11 = pneg %p397_p10  ;;  %s81_s20 = int_to_ptr.vmem [resolvable:$true] %s80_s20 }
  0x10   : > { %s255_s21 = scalar_lea.vmem %s81_s20, 128  ;;  %p263_p3 = scmp.lt.s32.totalorder %s81_s20, %s81_s20 }
  0x11   : > { %p201_p12 = pnand %p208_p9, %p200_p11  ;;  %p256_p0 = scmp.ne.s32.totalorder %s81_s20, %s255_s21 }
  0x12   : > { %p264_p4 = scmp.lt.s32.totalorder %s255_s21, %s255_s21 }
  0x13   : > { %p246_p13 = pneg %p201_p12 }
  0x14   : > { %p265_p6 = por %p264_p4, %p263_p3 }
  0x15   : > { %p258_p1 = pnand %p256_p0, %p246_p13 }
  0x17   : > { %p259_p2 = pneg %p258_p1 }
  0x19   : > { %p266_p7 = pnand %p265_p6, %p259_p2 }
  0x1b   : > { %269 = shalt.err (!%p266_p7)
}
  0x1c   : > { %203 = dma.hbm_to_vmem [thread:$0]  (!%p201_p12), %s448_s0, 128, %s81_s20, [#allocation3]  }
  0x1d   : > { %93 = sbr.rel (%p397_p10) target bundleno = 60 (0x3c), region = 24 }
  0x22   : > { %313 = dma.done.wait (%p208_p9), [#allocation3], 128  }
  0x23   : > { %315 = vsyncadd (%p208_p9), [#allocation3], 4294967168  ;;  %s105_s24 = sand.u32 1, %s326_s7   ;;  %s191_s28 = sshll.u32 %s369_s10, 7  ;;  %v108_v0 = vld [vmem:[#allocation2] sm:$0xff] }
  0x24   : > { %s189_s25 = sshll.u32 %s105_s24, 3  ;;  %v109_v1 = vadd.f32 1.0, %v108_v0  ;;  %s123_s2 = scalar_lea.hbm %s449_s1, %s191_s28 }
  0x25   : > { %s107_s26 = scalar_lea.vmem [#allocation5], %s189_s25  ;;  %s112_s3 = scalar_lea.sflag [#allocation4], %s105_s24 }
  0x26   : > { %s125_s27 = sshll.u32 %s107_s26, 4  ;;  %110 = vst [vmem:[%s107_s26] sm:$0xff] %v109_v1  ;;  %s337_s5 = smov [#allocation5]   ;;  %s126_s27 = int_to_ptr.vmem [resolvable:$true] %s125_s27 }
  0x27   : > { %s270_s4 = scalar_lea.vmem %s126_s27, 128  ;;  %s274_s11 = sshll.u32 %s337_s5, 4  ;;  %s275_s11 = int_to_ptr.vmem [resolvable:$false] %s274_s11 }
  0x28   : > { %p271_p6 = scmp.ne.s32.totalorder %s126_s27, %s270_s4  ;;  %s276_s13 = scalar_lea.vmem %s275_s11, 256 }
  0x29   : > { %p277_p10 = scmp.lt.s32.totalorder %s126_s27, %s275_s11  ;;  %p278_p11 = scmp.lt.s32.totalorder %s276_s13, %s270_s4 }
  0x2a   : > { %p272_p8 = pnand %p271_p6, %p386_p5 }
  0x2b   : > { %p279_p12 = por %p278_p11, %p277_p10 }
  0x2c   : > { %p273_p9 = pneg %p272_p8 }
  0x2e   : > { %p280_p13 = pnand %p279_p12, %p273_p9 }
  0x30   : > { %283 = shalt.err (!%p280_p13)
}
  0x31   : > { %s284_s10 = scalar_lea.hbm %s123_s2, 128  ;;  %s288_s19 = scalar_lea.hbm %s449_s1, 256 }
  0x32   : > { %p285_p0 = scmp.ne.s32.totalorder %s123_s2, %s284_s10  ;;  %p289_p3 = scmp.lt.s32.totalorder %s123_s2, %s449_s1 }
  0x33   : > { %p290_p4 = scmp.lt.s32.totalorder %s288_s19, %s284_s10 }
  0x34   : > { %p286_p1 = pnand %p285_p0, %p386_p5 }
  0x35   : > { %p291_p7 = por %p290_p4, %p289_p3 }
  0x36   : > { %p287_p2 = pneg %p286_p1 }
  0x38   : > { %p292_p6 = pnand %p291_p7, %p287_p2 }
  0x3a   : > { %295 = shalt.err (!%p292_p6)
}
  0x3b   : > { %198 = dma.vmem_to_hbm [thread:$0]  (%p386_p5), %s126_s27, 128, %s123_s2, %s112_s3  }
  0x3c PF: > { %p210_p8 = scmp.ge.s32.totalorder %s334_s9, 2  ;;  %s137_s22 = sand.u32 1, %s322_s6  }
  0x3d   : > { %p453_p9 = scmp.ne.s32.totalorder %s451_s17, 0  ;;  %s138_s23 = scalar_lea.sflag [#allocation4], %s137_s22 }
  0x3f   : > { %p205_p10 = pnand %p210_p8, %p453_p9 }
  0x41   : > { %p206_p11 = pneg %p205_p10 }
  0x43   : > { %317 = dma.done.wait (%p206_p11), %s138_s23, 128  }
  0x44   : > { %319 = vsyncadd (%p206_p11), %s138_s23, 4294967168  ;;  %p12_p12 = scmp.ge.s32.totalorder %s373_s12, 4   ;;  %s454_s6 = smov %s326_s7 }
  0x45   : > { %s455_s7 = smov %s330_s8  ;;  %s456_s8 = smov %s384_s15 }
  0x46   : > { %s457_s9 = smov %s373_s12  ;;  %14 = sbr.rel (!%p12_p12) target bundleno = 4 (0x4), region = 61 }
  0x4b   :  { %143 = vsyncpa [#allocation3], 1 }
  0x4c   :  { %145 = vsyncpa [#allocation3 + $0x1], 1 }
  0x4d   :  { %146 = vsyncpa [#allocation4], 1 }
  0x4e   :  { %148 = vsyncpa [#allocation4 + $0x1], 1 }

// kernel: _forward_impl.1
= control target key start
LH: loop header
LB: loop body
LE: loop exit
PB: predicated region body
PF: predicated region fallthrough
CT: control target
= control target key end

     0   :  { %s3261_s24 = smov 0   ;;  %s3263_s25 = smov 0   ;;  %s4159_s0 = inlined_call_operand.vmem [shape: f32[256,512], index: 0, kind: input, shape index: {}]   ;;  %s4160_s1 = inlined_call_operand.vmem [shape: bf16[512,512], index: 1, kind: input, shape index: {}]   ;;  %s4161_s2 = inlined_call_operand.vmem [shape: f32[1,512], index: 2, kind: input, shape index: {}]   ;;  %s4162_s3 = inlined_call_operand.vmem [shape: bf16[512,128], index: 3, kind: input, shape index: {}]   ;;  %s4163_s4 = inlined_call_operand.vmem [shape: f32[1,128], index: 4, kind: input, shape index: {}]   ;;  %s4164_s5 = inlined_call_operand.vmem [shape: bf16[128,4], index: 5, kind: input, shape index: {}]   ;;  %s4165_s6 = inlined_call_operand.vmem [shape: f32[1,4], index: 6, kind: input, shape index: {}]   ;;  %s4166_s7 = inlined_call_operand.vmem [shape: f32[256,4], index: 7, kind: output, shape index: {}]  }
   0x1   :  { %s3265_s26 = smov 0  }
   0x2 LB: > { %s29_s27 = sadd.s32 1, %s3215_s25  ;;  %p2570_p0 = scmp.ge.s32.totalorder %s3219_s26, 1  ;;  %s3219_s26 = sphi %s3265_s26, %s17_s26   ;;  %s3215_s25 = sphi %s3263_s25, %s4168_s25   ;;  %s3211_s24 = sphi %s3261_s24, %s4167_s24  }
   0x3   : > { %p31_p1 = scmp.ge.s32.totalorder %s29_s27, 2  ;;  %p251_p2 = scmp.lt.s32.totalorder %s3219_s26, 3 }
   0x5   : > { %s4170_s27 = smov (%p31_p1, %s29_s27), 0  ;;  %p252_p3 = pnand %p2570_p0, %p251_p2 }
   0x6   : > { %s2571_s8 = sshll.u32 (!%p252_p3), %s3211_s24, 4 }
   0x7   : > { %255 = sbr.rel (%p252_p3) target bundleno = 816 (0x330), region = 48  ;;  %p285_p4 = scmp.lt.s32.totalorder (!%p252_p3), %s2571_s8, 31 }
   0xc   : > { %v2965_v0 = vld [vmem:[%s4160_s1 + $0xe4] ss:$16 sps:$4 sm:$0xff]   ;;  %v2969_v2 = vld [vmem:[%s4160_s1 + $0xe0] ss:$16 sps:$4 sm:$0xff]   ;;  %s4172_s8 = smov (!%p285_p4, %s2571_s8), 31  ;;  %vm2484_vm0 = vcmask 31744  }
   0xd   : > { %v2967_v1 = vld [vmem:[%s4160_s1 + $0x2e4] ss:$16 sps:$4 sm:$0xff]   ;;  %1204 = vmatprep.subr.bf16.mxu0 %v2965_v0  ;;  %v2970_v3 = vld [vmem:[%s4160_s1 + $0x2e0] ss:$16 sps:$4 sm:$0xff]   ;;  %s2748_s12 = sshll.u32 %s4172_s8, 5  ;;  %s2575_s15 = sshll.u32 %s4172_s8, 3 }
   0xe   : > { %1317 = vmatprep.subr.bf16.mxu1 %v2967_v1  ;;  %v2971_v4 = vld [vmem:[%s4160_s1 + $0xc4] ss:$16 sps:$4 sm:$0xff]   ;;  %1205 = vmatpush1.bf16.msra.mxu0 %v2969_v2  ;;  %v2975_v6 = vld [vmem:[%s4160_s1 + $0xc0] ss:$16 sps:$4 sm:$0xff]   ;;  %s3420_s20 = scalar_lea.vmem %s4159_s0, %s2748_s12  ;;  %s4116_s19 = scalar_lea.vmem %s4166_s7, %s2575_s15 }
   0xf   : > { %1318 = vmatpush1.bf16.msra.mxu1 %v2970_v3  ;;  %v2973_v5 = vld [vmem:[%s4160_s1 + $0x2c4] ss:$16 sps:$4 sm:$0xff]   ;;  %1206 = vmatprep.subr.bf16.mxu0 %v2971_v4  ;;  %v2976_v7 = vld [vmem:[%s4160_s1 + $0x2c0] ss:$16 sps:$4 sm:$0xff]   ;;  %v319_v46 = vld [vmem:[%s3420_s20 + $0x8] sm:$0xff] }
  0x10   : > { %1319 = vmatprep.subr.bf16.mxu1 %v2973_v5  ;;  %v2977_v8 = vld [vmem:[%s4160_s1 + $0xa4] ss:$16 sps:$4 sm:$0xff]   ;;  %v2981_v10 = vld [vmem:[%s4160_s1 + $0xa0] ss:$16 sps:$4 sm:$0xff]   ;;  %v323_v47 = vld [vmem:[%s3420_s20 + $0x28] sm:$0xff] }
  0x11   : > { %v2979_v9 = vld [vmem:[%s4160_s1 + $0x2a4] ss:$16 sps:$4 sm:$0xff]   ;;  %v2982_v11 = vld [vmem:[%s4160_s1 + $0x2a0] ss:$16 sps:$4 sm:$0xff]   ;;  %v321_v48 = vld [vmem:[%s3420_s20 + $0x18] sm:$0xff]  ;;  %v3441_v53 = vpack.c.bf16 %v323_v47, %v319_v46 }
  0x12   : > { %1207 = vmatpush1.bf16.msra.mxu0 %v2975_v6  ;;  %v2983_v12 = vld [vmem:[%s4160_s1 + $0x84] ss:$16 sps:$4 sm:$0xff]   ;;  %v2987_v14 = vld [vmem:[%s4160_s1 + $0x80] ss:$16 sps:$4 sm:$0xff]   ;;  %v325_v49 = vld [vmem:[%s3420_s20 + $0x38] sm:$0xff] }
  0x13   : > { %1320 = vmatpush1.bf16.msra.mxu1 %v2976_v7  ;;  %1208 = vmatprep.subr.bf16.mxu0 %v2977_v8  ;;  %v2985_v13 = vld [vmem:[%s4160_s1 + $0x284] ss:$16 sps:$4 sm:$0xff]   ;;  %v2988_v15 = vld [vmem:[%s4160_s1 + $0x280] ss:$16 sps:$4 sm:$0xff]   ;;  %v3443_v54 = vpack.c.bf16 %v325_v49, %v321_v48 }
  0x14   : > { %1321 = vmatprep.subr.bf16.mxu1 %v2979_v9  ;;  %v2989_v16 = vld [vmem:[%s4160_s1 + $0x64] ss:$16 sps:$4 sm:$0xff]   ;;  %v2993_v18 = vld [vmem:[%s4160_s1 + $0x60] ss:$16 sps:$4 sm:$0xff]   ;;  %1236 = vmatprep.mubr.bf16.mxu0 %v3441_v53 }
  0x15   : > { %v2991_v17 = vld [vmem:[%s4160_s1 + $0x264] ss:$16 sps:$4 sm:$0xff]   ;;  %v2994_v19 = vld [vmem:[%s4160_s1 + $0x260] ss:$16 sps:$4 sm:$0xff]   ;;  %1349 = vmatprep.mubr.bf16.mxu1 %v3443_v54 }
  0x16   : > { %1209 = vmatpush1.bf16.msra.mxu0 %v2981_v10  ;;  %v2995_v20 = vld [vmem:[%s4160_s1 + $0x44] ss:$16 sps:$4 sm:$0xff]   ;;  %v2999_v22 = vld [vmem:[%s4160_s1 + $0x40] ss:$16 sps:$4 sm:$0xff]   ;;  %v3063_v10 = vld [vmem:[%s4160_s1 + $0xec] ss:$16 sps:$4 sm:$0xff]  }
  0x17   : > { %1322 = vmatpush1.bf16.msra.mxu1 %v2982_v11  ;;  %1210 = vmatprep.subr.bf16.mxu0 %v2983_v12  ;;  %v2997_v21 = vld [vmem:[%s4160_s1 + $0x244] ss:$16 sps:$4 sm:$0xff]   ;;  %v3000_v23 = vld [vmem:[%s4160_s1 + $0x240] ss:$16 sps:$4 sm:$0xff]   ;;  %v3066_v11 = vld [vmem:[%s4160_s1 + $0x2ec] ss:$16 sps:$4 sm:$0xff]  }
  0x18   : > { %1323 = vmatprep.subr.bf16.mxu1 %v2985_v13  ;;  %v3001_v24 = vld [vmem:[%s4160_s1 + $0x24] ss:$16 sps:$4 sm:$0xff]   ;;  %v3005_v26 = vld [vmem:[%s4160_s1 + $0x20] ss:$16 sps:$4 sm:$0xff]   ;;  %v3061_v12 = vld [vmem:[%s4160_s1 + $0xe8] ss:$16 sps:$4 sm:$0xff]  }
  0x19   : > { %v3003_v25 = vld [vmem:[%s4160_s1 + $0x224] ss:$16 sps:$4 sm:$0xff]   ;;  %v3006_v27 = vld [vmem:[%s4160_s1 + $0x220] ss:$16 sps:$4 sm:$0xff]   ;;  %v3064_v13 = vld [vmem:[%s4160_s1 + $0x2e8] ss:$16 sps:$4 sm:$0xff]  }
  0x1a   : > { %1211 = vmatpush1.bf16.msra.mxu0 %v2987_v14  ;;  %v3007_v28 = vld [vmem:[%s4160_s1 + $0x4] ss:$16 sps:$4 sm:$0xff]   ;;  %v3011_v30 = vld [vmem:[%s4160_s1] ss:$16 sps:$4 sm:$0xff]   ;;  %v327_v14 = vld [vmem:[%s3420_s20 + $0x48] sm:$0xff] }
  0x1b   : > { %1324 = vmatpush1.bf16.msra.mxu1 %v2988_v15  ;;  %1212 = vmatprep.subr.bf16.mxu0 %v2989_v16  ;;  %v3009_v29 = vld [vmem:[%s4160_s1 + $0x204] ss:$16 sps:$4 sm:$0xff]   ;;  %v3012_v31 = vld [vmem:[%s4160_s1 + $0x200] ss:$16 sps:$4 sm:$0xff]   ;;  %v331_v15 = vld [vmem:[%s3420_s20 + $0x68] sm:$0xff] }
  0x1c   : > { %1325 = vmatprep.subr.bf16.mxu1 %v2991_v17  ;;  %v3013_v32 = vld [vmem:[%s4160_s1 + $0x1e4] ss:$16 sps:$4 sm:$0xff]   ;;  %v3017_v34 = vld [vmem:[%s4160_s1 + $0x1e0] ss:$16 sps:$4 sm:$0xff]  }
  0x1d   : > { %v3015_v33 = vld [vmem:[%s4160_s1 + $0x3e4] ss:$16 sps:$4 sm:$0xff]   ;;  %v3018_v35 = vld [vmem:[%s4160_s1 + $0x3e0] ss:$16 sps:$4 sm:$0xff]  }
  0x1e   : > { %1213 = vmatpush1.bf16.msra.mxu0 %v2993_v18  ;;  %v3019_v36 = vld [vmem:[%s4160_s1 + $0x1c4] ss:$16 sps:$4 sm:$0xff]   ;;  %v3023_v38 = vld [vmem:[%s4160_s1 + $0x1c0] ss:$16 sps:$4 sm:$0xff]   ;;  %v329_v18 = vld [vmem:[%s3420_s20 + $0x58] sm:$0xff] }
  0x1f   : > { %1326 = vmatpush1.bf16.msra.mxu1 %v2994_v19  ;;  %1214 = vmatprep.subr.bf16.mxu0 %v2995_v20  ;;  %v3021_v37 = vld [vmem:[%s4160_s1 + $0x3c4] ss:$16 sps:$4 sm:$0xff]   ;;  %v3024_v39 = vld [vmem:[%s4160_s1 + $0x3c0] ss:$16 sps:$4 sm:$0xff]   ;;  %v333_v19 = vld [vmem:[%s3420_s20 + $0x78] sm:$0xff] }
  0x20   : > { %1327 = vmatprep.subr.bf16.mxu1 %v2997_v21  ;;  %v3025_v40 = vld [vmem:[%s4160_s1 + $0x1a4] ss:$16 sps:$4 sm:$0xff]   ;;  %v3029_v42 = vld [vmem:[%s4160_s1 + $0x1a0] ss:$16 sps:$4 sm:$0xff]   ;;  %v3069_v20 = vld [vmem:[%s4160_s1 + $0xcc] ss:$16 sps:$4 sm:$0xff]  }
  0x21   : > { %v3027_v41 = vld [vmem:[%s4160_s1 + $0x3a4] ss:$16 sps:$4 sm:$0xff]   ;;  %v3030_v43 = vld [vmem:[%s4160_s1 + $0x3a0] ss:$16 sps:$4 sm:$0xff]   ;;  %v3072_v21 = vld [vmem:[%s4160_s1 + $0x2cc] ss:$16 sps:$4 sm:$0xff]  }
  0x22   : > { %1215 = vmatpush1.bf16.msra.mxu0 %v2999_v22  ;;  %v3031_v44 = vld [vmem:[%s4160_s1 + $0x184] ss:$16 sps:$4 sm:$0xff]   ;;  %v3035_v50 = vld [vmem:[%s4160_s1 + $0x180] ss:$16 sps:$4 sm:$0xff]   ;;  %v3067_v22 = vld [vmem:[%s4160_s1 + $0xc8] ss:$16 sps:$4 sm:$0xff]  }
  0x23   : > { %1328 = vmatpush1.bf16.msra.mxu1 %v3000_v23  ;;  %1216 = vmatprep.subr.bf16.mxu0 %v3001_v24  ;;  %v3033_v45 = vld [vmem:[%s4160_s1 + $0x384] ss:$16 sps:$4 sm:$0xff]   ;;  %v3036_v51 = vld [vmem:[%s4160_s1 + $0x380] ss:$16 sps:$4 sm:$0xff]   ;;  %v3525_v23 = vpack.c.bf16 %v331_v15, %v327_v14  ;;  %v3527_v24 = vpack.c.bf16 %v333_v19, %v329_v18  ;;  %v353_v18 = vld [vmem:[%s3420_s20 + $0x118] sm:$0xff] }
  0x24   : > { %1329 = vmatprep.subr.bf16.mxu1 %v3003_v25  ;;  %v3037_v52 = vld [vmem:[%s4160_s1 + $0x164] ss:$16 sps:$4 sm:$0xff]   ;;  %v3041_v56 = vld [vmem:[%s4160_s1 + $0x160] ss:$16 sps:$4 sm:$0xff]   ;;  %v3070_v25 = vld [vmem:[%s4160_s1 + $0x2c8] ss:$16 sps:$4 sm:$0xff]  }
  0x25   : > { %v3039_v55 = vld [vmem:[%s4160_s1 + $0x364] ss:$16 sps:$4 sm:$0xff]   ;;  %v3042_v57 = vld [vmem:[%s4160_s1 + $0x360] ss:$16 sps:$4 sm:$0xff]   ;;  %v357_v19 = vld [vmem:[%s3420_s20 + $0x138] sm:$0xff] }
  0x26   : > { %1217 = vmatpush1.bf16.msra.mxu0 %v3005_v26  ;;  %v3043_v58 = vld [vmem:[%s4160_s1 + $0x144] ss:$16 sps:$4 sm:$0xff]   ;;  %v3047_v60 = vld [vmem:[%s4160_s1 + $0x140] ss:$16 sps:$4 sm:$0xff]  }
  0x27   : > { %1330 = vmatpush1.bf16.msra.mxu1 %v3006_v27  ;;  %1218 = vmatprep.subr.bf16.mxu0 %v3007_v28  ;;  %v3045_v59 = vld [vmem:[%s4160_s1 + $0x344] ss:$16 sps:$4 sm:$0xff]   ;;  %v3048_v61 = vld [vmem:[%s4160_s1 + $0x340] ss:$16 sps:$4 sm:$0xff]  }
  0x28   : > { %1331 = vmatprep.subr.bf16.mxu1 %v3009_v29  ;;  %v3049_v62 = vld [vmem:[%s4160_s1 + $0x124] ss:$16 sps:$4 sm:$0xff]   ;;  %v3053_v0 = vld [vmem:[%s4160_s1 + $0x120] ss:$16 sps:$4 sm:$0xff]  }
  0x29   : > { %v3051_v63 = vld [vmem:[%s4160_s1 + $0x324] ss:$16 sps:$4 sm:$0xff]   ;;  %v3054_v1 = vld [vmem:[%s4160_s1 + $0x320] ss:$16 sps:$4 sm:$0xff]  }
  0x2a   : > { %1219 = vmatpush1.bf16.msra.mxu0 %v3011_v30  ;;  %v3055_v2 = vld [vmem:[%s4160_s1 + $0x104] ss:$16 sps:$4 sm:$0xff]   ;;  %v3059_v4 = vld [vmem:[%s4160_s1 + $0x100] ss:$16 sps:$4 sm:$0xff]   ;;  %v3075_v30 = vld [vmem:[%s4160_s1 + $0xac] ss:$16 sps:$4 sm:$0xff]  }
  0x2b   : > { %1332 = vmatpush1.bf16.msra.mxu1 %v3012_v31  ;;  %1220 = vmatprep.subr.bf16.mxu0 %v3013_v32  ;;  %v3057_v3 = vld [vmem:[%s4160_s1 + $0x304] ss:$16 sps:$4 sm:$0xff]   ;;  %v3060_v5 = vld [vmem:[%s4160_s1 + $0x300] ss:$16 sps:$4 sm:$0xff]   ;;  %v3078_v31 = vld [vmem:[%s4160_s1 + $0x2ac] ss:$16 sps:$4 sm:$0xff]  }
  0x2c   : > { %1333 = vmatprep.subr.bf16.mxu1 %v3015_v33  ;;  %v318_v6 = vld [vmem:[%s3420_s20] sm:$0xff]  ;;  %v320_v8 = vld [vmem:[%s3420_s20 + $0x10] sm:$0xff]  ;;  %v3073_v32 = vld [vmem:[%s4160_s1 + $0xa8] ss:$16 sps:$4 sm:$0xff]  }
  0x2d   : > { %v322_v7 = vld [vmem:[%s3420_s20 + $0x20] sm:$0xff]  ;;  %v324_v9 = vld [vmem:[%s3420_s20 + $0x30] sm:$0xff]  ;;  %v3076_v33 = vld [vmem:[%s4160_s1 + $0x2a8] ss:$16 sps:$4 sm:$0xff]  }
  0x2e   : > { %1221 = vmatpush2.bf16.msra.mxu0 %v3017_v34  ;;  %v3510_v16 = vpack.c.bf16 %v322_v7, %v318_v6  ;;  %v3512_v17 = vpack.c.bf16 %v324_v9, %v320_v8  ;;  %v326_v26 = vld [vmem:[%s3420_s20 + $0x40] sm:$0xff]  ;;  %v328_v28 = vld [vmem:[%s3420_s20 + $0x50] sm:$0xff]  ;;  %v335_v34 = vld [vmem:[%s3420_s20 + $0x88] sm:$0xff] }
  0x2f   : > { %1334 = vmatpush2.bf16.msra.mxu1 %v3018_v35  ;;  %1222 = vmatprep.subr.bf16.mxu0 %v3019_v36  ;;  %v330_v27 = vld [vmem:[%s3420_s20 + $0x60] sm:$0xff]  ;;  %v332_v29 = vld [vmem:[%s3420_s20 + $0x70] sm:$0xff]  ;;  %v339_v35 = vld [vmem:[%s3420_s20 + $0xa8] sm:$0xff] }
  0x30   : > { %1335 = vmatprep.subr.bf16.mxu1 %v3021_v37  ;;  %v3554_v36 = vpack.c.bf16 %v330_v27, %v326_v26  ;;  %v3556_v37 = vpack.c.bf16 %v332_v29, %v328_v28  ;;  %v334_v46 = vld [vmem:[%s3420_s20 + $0x80] sm:$0xff]  ;;  %v336_v48 = vld [vmem:[%s3420_s20 + $0x90] sm:$0xff]  ;;  %v3099_v8 = vld [vmem:[%s4160_s1 + $0x2c] ss:$16 sps:$4 sm:$0xff]   ;;  %v3659_v26 = vpack.c.bf16 %v357_v19, %v353_v18 }
  0x31   : > { %v338_v47 = vld [vmem:[%s3420_s20 + $0xa0] sm:$0xff]  ;;  %v340_v49 = vld [vmem:[%s3420_s20 + $0xb0] sm:$0xff]  ;;  %v3102_v9 = vld [vmem:[%s4160_s1 + $0x22c] ss:$16 sps:$4 sm:$0xff]  }
  0x32   : > { %1223 = vmatpush2.bf16.msra.mxu0 %v3023_v38  ;;  %v337_v38 = vld [vmem:[%s3420_s20 + $0x98] sm:$0xff]  ;;  %v344_v6 = vld [vmem:[%s3420_s20 + $0xd0] sm:$0xff]  ;;  %v350_v28 = vld [vmem:[%s3420_s20 + $0x100] sm:$0xff] }
  0x33   : > { %1336 = vmatpush2.bf16.msra.mxu1 %v3024_v39  ;;  %1224 = vmatprep.subr.bf16.mxu0 %v3025_v40  ;;  %v341_v39 = vld [vmem:[%s3420_s20 + $0xb8] sm:$0xff]  ;;  %v348_v7 = vld [vmem:[%s3420_s20 + $0xf0] sm:$0xff]  ;;  %v354_v29 = vld [vmem:[%s3420_s20 + $0x120] sm:$0xff] }
  0x34   : > { %1337 = vmatprep.subr.bf16.mxu1 %v3027_v41  ;;  %v3081_v40 = vld [vmem:[%s4160_s1 + $0x8c] ss:$16 sps:$4 sm:$0xff]   ;;  %v3644_v15 = vpack.c.bf16 %v348_v7, %v344_v6  ;;  %v3106_v27 = vld [vmem:[%s4160_s1 + $0x208] ss:$16 sps:$4 sm:$0xff]   ;;  %v366_v18 = vld [vmem:[%s3420_s20 + $0x180] sm:$0xff] }
  0x35   : > { %v3084_v41 = vld [vmem:[%s4160_s1 + $0x28c] ss:$16 sps:$4 sm:$0xff]   ;;  %v370_v19 = vld [vmem:[%s3420_s20 + $0x1a0] sm:$0xff] }
  0x36   : > { %1225 = vmatpush2.bf16.msra.mxu0 %v3029_v42  ;;  %v3079_v42 = vld [vmem:[%s4160_s1 + $0x88] ss:$16 sps:$4 sm:$0xff]  }
  0x37   : > { %1338 = vmatpush2.bf16.msra.mxu1 %v3030_v43  ;;  %1226 = vmatprep.subr.bf16.mxu0 %v3031_v44  ;;  %v3569_v43 = vpack.c.bf16 %v339_v35, %v335_v34  ;;  %v3571_v44 = vpack.c.bf16 %v341_v39, %v337_v38  ;;  %v3109_v34 = vld [vmem:[%s4160_s1 + $0x1e8] ss:$16 sps:$4 sm:$0xff]  }
  0x38   : > { %1339 = vmatprep.subr.bf16.mxu1 %v3033_v45  ;;  %v3082_v45 = vld [vmem:[%s4160_s1 + $0x288] ss:$16 sps:$4 sm:$0xff]  }
  0x39   : > { %v3112_v35 = vld [vmem:[%s4160_s1 + $0x3e8] ss:$16 sps:$4 sm:$0xff]  }
  0x3a   : > { %1227 = vmatpush2.bf16.msra.mxu0 %v3035_v50  ;;  %v3087_v50 = vld [vmem:[%s4160_s1 + $0x6c] ss:$16 sps:$4 sm:$0xff]  }
  0x3b   : > { %1340 = vmatpush2.bf16.msra.mxu1 %v3036_v51  ;;  %1228 = vmatprep.subr.bf16.mxu0 %v3037_v52  ;;  %v3090_v51 = vld [vmem:[%s4160_s1 + $0x26c] ss:$16 sps:$4 sm:$0xff]   ;;  %v3085_v52 = vld [vmem:[%s4160_s1 + $0x68] ss:$16 sps:$4 sm:$0xff]  }
  0x3c   : > { %1341 = vmatprep.subr.bf16.mxu1 %v3039_v55  ;;  %v3088_v55 = vld [vmem:[%s4160_s1 + $0x268] ss:$16 sps:$4 sm:$0xff]  }
  0x3d   : > { %v359_v38 = vld [vmem:[%s3420_s20 + $0x148] sm:$0xff]  ;;  %v369_v6 = vld [vmem:[%s3420_s20 + $0x198] sm:$0xff] }
  0x3e   : > { %1229 = vmatpush2.bf16.msra.mxu0 %v3041_v56  ;;  %v343_v56 = vld [vmem:[%s3420_s20 + $0xc8] sm:$0xff]  ;;  %v373_v7 = vld [vmem:[%s3420_s20 + $0x1b8] sm:$0xff] }
  0x3f   : > { %1342 = vmatpush2.bf16.msra.mxu1 %v3042_v57  ;;  %1230 = vmatprep.subr.bf16.mxu0 %v3043_v58  ;;  %v347_v57 = vld [vmem:[%s3420_s20 + $0xe8] sm:$0xff]  ;;  %v3598_v58 = vpack.c.bf16 %v338_v47, %v334_v46 }
  0x40   : > { %1343 = vmatprep.subr.bf16.mxu1 %v3045_v59  ;;  %v3600_v59 = vpack.c.bf16 %v340_v49, %v336_v48  ;;  %v363_v39 = vld [vmem:[%s3420_s20 + $0x168] sm:$0xff] }
  0x41   : > { %v3117_v46 = vld [vmem:[%s4160_s1 + $0x1cc] ss:$16 sps:$4 sm:$0xff]   ;;  %v3115_v48 = vld [vmem:[%s4160_s1 + $0x1c8] ss:$16 sps:$4 sm:$0xff]   ;;  %v3701_v49 = vpack.c.bf16 %v363_v39, %v359_v38 }
  0x42   : > { %1231 = vmatpush2.bf16.msra.mxu0 %v3047_v60  ;;  %v345_v60 = vld [vmem:[%s3420_s20 + $0xd8] sm:$0xff] }
  0x43   : > { %1344 = vmatpush2.bf16.msra.mxu1 %v3048_v61  ;;  %1232 = vmatprep.subr.bf16.mxu0 %v3049_v62  ;;  %v349_v61 = vld [vmem:[%s3420_s20 + $0xf8] sm:$0xff] }
  0x44   : > { %1345 = vmatprep.subr.bf16.mxu1 %v3051_v63  ;;  %v3093_v62 = vld [vmem:[%s4160_s1 + $0x4c] ss:$16 sps:$4 sm:$0xff]  }
  0x45   : > { %v3096_v63 = vld [vmem:[%s4160_s1 + $0x24c] ss:$16 sps:$4 sm:$0xff]  }
  0x46   : > { %1233 = vmatpush2.bf16.msra.mxu0 %v3053_v0  ;;  %v3091_v0 = vld [vmem:[%s4160_s1 + $0x48] ss:$16 sps:$4 sm:$0xff]   ;;  %v3120_v47 = vld [vmem:[%s4160_s1 + $0x3cc] ss:$16 sps:$4 sm:$0xff]  }
  0x47   : > { %1346 = vmatpush2.bf16.msra.mxu1 %v3054_v1  ;;  %1234 = vmatprep.subr.bf16.mxu0 %v3055_v2  ;;  %v3613_v1 = vpack.c.bf16 %v347_v57, %v343_v56  ;;  %v3615_v2 = vpack.c.bf16 %v349_v61, %v345_v60  ;;  %v360_v56 = vld [vmem:[%s3420_s20 + $0x150] sm:$0xff]  ;;  %v3123_v60 = vld [vmem:[%s4160_s1 + $0x1ac] ss:$16 sps:$4 sm:$0xff]  }
  0x48   : > { %1347 = vmatprep.subr.bf16.mxu1 %v3057_v3  ;;  %v3094_v3 = vld [vmem:[%s4160_s1 + $0x248] ss:$16 sps:$4 sm:$0xff]   ;;  %v364_v57 = vld [vmem:[%s3420_s20 + $0x170] sm:$0xff]  ;;  %v3126_v61 = vld [vmem:[%s4160_s1 + $0x3ac] ss:$16 sps:$4 sm:$0xff]  }
  0x49   : > { %v3141_v38 = vld [vmem:[%s4160_s1 + $0x14c] ss:$16 sps:$4 sm:$0xff]  }
  0x4a   : > { %1235 = vmatpush2.bf16.msra.mxu0 %v3059_v4  ;;  %v342_v4 = vld [vmem:[%s3420_s20 + $0xc0] sm:$0xff]  ;;  %v3144_v39 = vld [vmem:[%s4160_s1 + $0x34c] ss:$16 sps:$4 sm:$0xff]  }
  0x4b   : > { %1348 = vmatpush2.bf16.msra.mxu1 %v3060_v5  ;;  %1430 = vmatprep.subr.bf16.mxu0 %v3063_v10  ;;  %v346_v5 = vld [vmem:[%s3420_s20 + $0xe0] sm:$0xff]  ;;  %v3097_v10 = vld [vmem:[%s4160_s1 + $0x28] ss:$16 sps:$4 sm:$0xff]  }
  0x4c   : > { %1543 = vmatprep.subr.bf16.mxu1 %v3066_v11  ;;  %v3100_v11 = vld [vmem:[%s4160_s1 + $0x228] ss:$16 sps:$4 sm:$0xff]   ;;  %v3642_v14 = vpack.c.bf16 %v346_v5, %v342_v4  ;;  %v3732_v5 = vpack.c.bf16 %v364_v57, %v360_v56  ;;  %v3147_v56 = vld [vmem:[%s4160_s1 + $0x12c] ss:$16 sps:$4 sm:$0xff]  }
  0x4d   : > { %1237 = vmatmul.mubr.bf16.vlgmr.msra.gmra.mxu0 %v3510_v16  ;;  %v3150_v57 = vld [vmem:[%s4160_s1 + $0x32c] ss:$16 sps:$4 sm:$0xff]  }
  0x4e   : > { %1350 = vmatmul.mubr.bf16.vlgmr.msra.gmra.mxu1 %v3512_v17  ;;  %1431 = vmatpush1.bf16.msra.mxu0 %v3061_v12  ;;  %v351_v12 = vld [vmem:[%s3420_s20 + $0x108] sm:$0xff] }
  0x4f   : > { %1544 = vmatpush1.bf16.msra.mxu1 %v3064_v13  ;;  %1432 = vmatprep.subr.bf16.mxu0 %v3069_v20  ;;  %v355_v13 = vld [vmem:[%s3420_s20 + $0x128] sm:$0xff] }
  0x50   : > { %1545 = vmatprep.subr.bf16.mxu1 %v3072_v21  ;;  %1246 = vmatprep.mubr.bf16.mxu0 %v3525_v23  ;;  %v3105_v20 = vld [vmem:[%s4160_s1 + $0xc] ss:$16 sps:$4 sm:$0xff]  }
  0x51   : > { %1359 = vmatprep.mubr.bf16.mxu1 %v3527_v24  ;;  %v3108_v21 = vld [vmem:[%s4160_s1 + $0x20c] ss:$16 sps:$4 sm:$0xff]  }
  0x52   : > { %1433 = vmatpush1.bf16.msra.mxu0 %v3067_v22  ;;  %v3103_v22 = vld [vmem:[%s4160_s1 + $0x8] ss:$16 sps:$4 sm:$0xff]  }
  0x53   : > { %1546 = vmatpush1.bf16.msra.mxu1 %v3070_v25  ;;  %1434 = vmatprep.subr.bf16.mxu0 %v3075_v30  ;;  %v3657_v25 = vpack.c.bf16 %v355_v13, %v351_v12  ;;  %v352_v30 = vld [vmem:[%s3420_s20 + $0x110] sm:$0xff]  ;;  %v3750_v13 = vpack.c.bf16 %v373_v7, %v369_v6  ;;  %v3151_v6 = vld [vmem:[%s4160_s1 + $0x108] ss:$16 sps:$4 sm:$0xff]  }
  0x54   : > { %1547 = vmatprep.subr.bf16.mxu1 %v3078_v31  ;;  %v356_v31 = vld [vmem:[%s3420_s20 + $0x130] sm:$0xff]  ;;  %v3154_v7 = vld [vmem:[%s4160_s1 + $0x308] ss:$16 sps:$4 sm:$0xff]  }
  0x55   : > { %1247 = vmatmul.mubr.bf16.gmra.mxu0 %v3554_v36 }
  0x56   : > { %1360 = vmatmul.mubr.bf16.gmra.mxu1 %v3556_v37  ;;  %1435 = vmatpush1.bf16.msra.mxu0 %v3073_v32  ;;  %v3111_v32 = vld [vmem:[%s4160_s1 + $0x1ec] ss:$16 sps:$4 sm:$0xff]  }
  0x57   : > { %1548 = vmatpush1.bf16.msra.mxu1 %v3076_v33  ;;  %1436 = vmatprep.subr.bf16.mxu0 %v3081_v40  ;;  %v3114_v33 = vld [vmem:[%s4160_s1 + $0x3ec] ss:$16 sps:$4 sm:$0xff]   ;;  %v3686_v40 = vpack.c.bf16 %v354_v29, %v350_v28 }
  0x58   : > { %1549 = vmatprep.subr.bf16.mxu1 %v3084_v41  ;;  %1256 = vmatprep.mubr.bf16.mxu0 %v3569_v43  ;;  %v3688_v41 = vpack.c.bf16 %v356_v31, %v352_v30  ;;  %v375_v28 = vld [vmem:[%s3420_s20 + $0x1c8] sm:$0xff] }
  0x59   : > { %1369 = vmatprep.mubr.bf16.mxu1 %v3571_v44  ;;  %v379_v29 = vld [vmem:[%s3420_s20 + $0x1e8] sm:$0xff] }
  0x5a   : > { %1437 = vmatpush1.bf16.msra.mxu0 %v3079_v42  ;;  %v361_v42 = vld [vmem:[%s3420_s20 + $0x158] sm:$0xff] }
  0x5b   : > { %1550 = vmatpush1.bf16.msra.mxu1 %v3082_v45  ;;  %1438 = vmatprep.subr.bf16.mxu0 %v3087_v50  ;;  %v365_v45 = vld [vmem:[%s3420_s20 + $0x178] sm:$0xff] }
  0x5c   : > { %1551 = vmatprep.subr.bf16.mxu1 %v3090_v51  ;;  %v3703_v50 = vpack.c.bf16 %v365_v45, %v361_v42  ;;  %v3118_v51 = vld [vmem:[%s4160_s1 + $0x3c8] ss:$16 sps:$4 sm:$0xff]  }
  0x5d   : > { %1257 = vmatmul.mubr.bf16.gmra.mxu0 %v3598_v58  ;;  %v3133_v30 = vld [vmem:[%s4160_s1 + $0x168] ss:$16 sps:$4 sm:$0xff]  }
  0x5e   : > { %1370 = vmatmul.mubr.bf16.gmra.mxu1 %v3600_v59  ;;  %1439 = vmatpush1.bf16.msra.mxu0 %v3085_v52  ;;  %v358_v52 = vld [vmem:[%s3420_s20 + $0x140] sm:$0xff]  ;;  %v3136_v31 = vld [vmem:[%s4160_s1 + $0x368] ss:$16 sps:$4 sm:$0xff]  }
  0x5f   : > { %1552 = vmatpush1.bf16.msra.mxu1 %v3088_v55  ;;  %1440 = vmatprep.subr.bf16.mxu0 %v3093_v62  ;;  %v362_v55 = vld [vmem:[%s3420_s20 + $0x160] sm:$0xff]  ;;  %v3121_v62 = vld [vmem:[%s4160_s1 + $0x1a8] ss:$16 sps:$4 sm:$0xff]  }
  0x60   : > { %1553 = vmatprep.subr.bf16.mxu1 %v3096_v63  ;;  %1266 = vmatprep.mubr.bf16.mxu0 %v3613_v1  ;;  %v3124_v63 = vld [vmem:[%s4160_s1 + $0x3a8] ss:$16 sps:$4 sm:$0xff]   ;;  %v3730_v4 = vpack.c.bf16 %v362_v55, %v358_v52  ;;  %v376_v52 = vld [vmem:[%s3420_s20 + $0x1d0] sm:$0xff] }
  0x61   : > { %1379 = vmatprep.mubr.bf16.mxu1 %v3615_v2  ;;  %v3139_v42 = vld [vmem:[%s4160_s1 + $0x148] ss:$16 sps:$4 sm:$0xff]   ;;  %v380_v55 = vld [vmem:[%s3420_s20 + $0x1f0] sm:$0xff] }
  0x62   : > { %1441 = vmatpush1.bf16.msra.mxu0 %v3091_v0  ;;  %v367_v0 = vld [vmem:[%s3420_s20 + $0x188] sm:$0xff] }
  0x63   : > { %1554 = vmatpush1.bf16.msra.mxu1 %v3094_v3  ;;  %1442 = vmatprep.subr.bf16.mxu0 %v3099_v8  ;;  %v371_v3 = vld [vmem:[%s3420_s20 + $0x1a8] sm:$0xff] }
  0x64   : > { %1555 = vmatprep.subr.bf16.mxu1 %v3102_v9  ;;  %v3129_v8 = vld [vmem:[%s4160_s1 + $0x18c] ss:$16 sps:$4 sm:$0xff]   ;;  %v3748_v12 = vpack.c.bf16 %v371_v3, %v367_v0  ;;  %v3142_v45 = vld [vmem:[%s4160_s1 + $0x348] ss:$16 sps:$4 sm:$0xff]  }
  0x65   : > { %1267 = vmatmul.mubr.bf16.gmra.mxu0 %v3642_v14  ;;  %v3132_v9 = vld [vmem:[%s4160_s1 + $0x38c] ss:$16 sps:$4 sm:$0xff]  }
  0x66   : > { %1380 = vmatmul.mubr.bf16.gmra.mxu1 %v3644_v15  ;;  %1443 = vmatpush1.bf16.msra.mxu0 %v3097_v10  ;;  %v3127_v10 = vld [vmem:[%s4160_s1 + $0x188] ss:$16 sps:$4 sm:$0xff]   ;;  %v3153_v0 = vld [vmem:[%s4160_s1 + $0x10c] ss:$16 sps:$4 sm:$0xff]  }
  0x67   : > { %1556 = vmatpush1.bf16.msra.mxu1 %v3100_v11  ;;  %1444 = vmatprep.subr.bf16.mxu0 %v3105_v20  ;;  %v3130_v11 = vld [vmem:[%s4160_s1 + $0x388] ss:$16 sps:$4 sm:$0xff]   ;;  %v368_v20 = vld [vmem:[%s3420_s20 + $0x190] sm:$0xff]  ;;  %v3156_v3 = vld [vmem:[%s4160_s1 + $0x30c] ss:$16 sps:$4 sm:$0xff]  }
  0x68   : > { %1557 = vmatprep.subr.bf16.mxu1 %v3108_v21  ;;  %1276 = vmatprep.mubr.bf16.mxu0 %v3657_v25  ;;  %v372_v21 = vld [vmem:[%s3420_s20 + $0x1b0] sm:$0xff] }
  0x69   : > { %1389 = vmatprep.mubr.bf16.mxu1 %v3659_v26 }
  0x6a   : > { %1445 = vmatpush1.bf16.msra.mxu0 %v3103_v22  ;;  %v3135_v22 = vld [vmem:[%s4160_s1 + $0x16c] ss:$16 sps:$4 sm:$0xff]  }
  0x6b   : > { %1558 = vmatpush1.bf16.msra.mxu1 %v3106_v27  ;;  %1446 = vmatprep.subr.bf16.mxu0 %v3111_v32  ;;  %v3138_v27 = vld [vmem:[%s4160_s1 + $0x36c] ss:$16 sps:$4 sm:$0xff]  }
  0x6c   : > { %1559 = vmatprep.subr.bf16.mxu1 %v3114_v33  ;;  %v377_v32 = vld [vmem:[%s3420_s20 + $0x1d8] sm:$0xff]  ;;  %v3775_v33 = vpack.c.bf16 %v370_v19, %v366_v18  ;;  %v3175_v18 = vld [vmem:[%s4162_s3 + $0xf0] sm:$0xff]   ;;  %v3188_v19 = vld [vmem:[%s4162_s3 + $0x80] sm:$0xff]  }
  0x6d   : > { %1277 = vmatmul.mubr.bf16.gmra.mxu0 %v3686_v40 }
  0x6e   : > { %1390 = vmatmul.mubr.bf16.gmra.mxu1 %v3688_v41  ;;  %1447 = vmatpush2.bf16.msra.mxu0 %v3109_v34  ;;  %v3777_v34 = vpack.c.bf16 %v372_v21, %v368_v20  ;;  %v544_v20 = vlaneseq }
  0x6f   : > { %1560 = vmatpush2.bf16.msra.mxu1 %v3112_v35  ;;  %1448 = vmatprep.subr.bf16.mxu0 %v3117_v46  ;;  %v381_v35 = vld [vmem:[%s3420_s20 + $0x1f8] sm:$0xff]  ;;  %v3792_v46 = vpack.c.bf16 %v379_v29, %v375_v28  ;;  %v3969_v28 = vld [vmem:[%s4161_s2] sm:$0xf] }
  0x70   : > { %1561 = vmatprep.subr.bf16.mxu1 %v3120_v47  ;;  %1286 = vmatprep.mubr.bf16.mxu0 %v3701_v49  ;;  %v3794_v47 = vpack.c.bf16 %v381_v35, %v377_v32  ;;  %v3962_v21 = vshrl.u32 %v544_v20, 7 }
  0x71   : > { %1399 = vmatprep.mubr.bf16.mxu1 %v3703_v50 }
  0x72   : > { %1449 = vmatpush2.bf16.msra.mxu0 %v3115_v48  ;;  %v374_v48 = vld [vmem:[%s3420_s20 + $0x1c0] sm:$0xff] }
  0x73   : > { %1562 = vmatpush2.bf16.msra.mxu1 %v3118_v51  ;;  %1450 = vmatprep.subr.bf16.mxu0 %v3123_v60  ;;  %v378_v51 = vld [vmem:[%s3420_s20 + $0x1e0] sm:$0xff]  ;;  %v3145_v60 = vld [vmem:[%s4160_s1 + $0x128] ss:$16 sps:$4 sm:$0xff]  }
  0x74   : > { %1563 = vmatprep.subr.bf16.mxu1 %v3126_v61  ;;  %v3148_v61 = vld [vmem:[%s4160_s1 + $0x328] ss:$16 sps:$4 sm:$0xff]  }
  0x75   : > { %1287 = vmatmul.mubr.bf16.gmra.mxu0 %v3730_v4 }
  0x76   : > { %1400 = vmatmul.mubr.bf16.gmra.mxu1 %v3732_v5  ;;  %1451 = vmatpush2.bf16.msra.mxu0 %v3121_v62  ;;  %v3816_v62 = vpack.c.bf16 %v378_v51, %v374_v48 }
  0x77   : > { %1564 = vmatpush2.bf16.msra.mxu1 %v3124_v63  ;;  %1452 = vmatprep.subr.bf16.mxu0 %v3129_v8  ;;  %v3818_v63 = vpack.c.bf16 %v380_v55, %v376_v52  ;;  %v3157_v8 = vld [vmem:[%s4162_s3 + $0x78] sm:$0xff]  }
  0x78   : > { %1565 = vmatprep.subr.bf16.mxu1 %v3132_v9  ;;  %1296 = vmatprep.mubr.bf16.mxu0 %v3748_v12  ;;  %v3158_v9 = vld [vmem:[%s4162_s3 + $0x38] sm:$0xff]  }
  0x79   : > { %1409 = vmatprep.mubr.bf16.mxu1 %v3750_v13 }
  0x7a   : > { %1453 = vmatpush2.bf16.msra.mxu0 %v3127_v10  ;;  %v3159_v10 = vld [vmem:[%s4162_s3 + $0x70] sm:$0xff]  }
  0x7b   : > { %1566 = vmatpush2.bf16.msra.mxu1 %v3130_v11  ;;  %1454 = vmatprep.subr.bf16.mxu0 %v3135_v22  ;;  %v3172_v11 = vld [vmem:[%s4162_s3] sm:$0xff]   ;;  %v550_v22 = vsub.s32 1, %v3962_v21 }
  0x7c   : > { %1567 = vmatprep.subr.bf16.mxu1 %v3138_v27  ;;  %v546_v27 = vsub.s32 0, %v3962_v21 }
  0x7d   : > { %1297 = vmatmul.mubr.bf16.gmra.mxu0 %v3775_v33  ;;  %v3972_v29 = vrot.slane %v3969_v28, %v550_v22 }
  0x7e   : > { %1410 = vmatmul.mubr.bf16.gmra.mxu1 %v3777_v34  ;;  %1455 = vmatpush2.bf16.msra.mxu0 %v3133_v30  ;;  %v3975_v30 = vrot.slane %v3969_v28, %v546_v27 }
  0x7f   : > { %1568 = vmatpush2.bf16.msra.mxu1 %v3136_v31  ;;  %1456 = vmatprep.subr.bf16.mxu0 %v3141_v38 }
  0x80   : > { %1569 = vmatprep.subr.bf16.mxu1 %v3144_v39  ;;  %1306 = vmatprep.mubr.bf16.mxu0 %v3792_v46 }
  0x81   : > { %1419 = vmatprep.mubr.bf16.mxu1 %v3794_v47 }
  0x82   : > { %1457 = vmatpush2.bf16.msra.mxu0 %v3139_v42 }
  0x83   : > { %1570 = vmatpush2.bf16.msra.mxu1 %v3142_v45  ;;  %1458 = vmatprep.subr.bf16.mxu0 %v3147_v56 }
  0x84   : > { %1571 = vmatprep.subr.bf16.mxu1 %v3150_v57 }
  0x85   : > { %1307 = vmatmul.mubr.bf16.gmra.mxu0 %v3816_v62 }
  0x86   : > { %1420 = vmatmul.mubr.bf16.gmra.mxu1 %v3818_v63  ;;  %1459 = vmatpush2.bf16.msra.mxu0 %v3145_v60 }
  0x87   : > { %1572 = vmatpush2.bf16.msra.mxu1 %v3148_v61  ;;  %1460 = vmatprep.subr.bf16.mxu0 %v3153_v0 }
  0x88   : > { %1573 = vmatprep.subr.bf16.mxu1 %v3156_v3  ;;  %1462 = vmatprep.mubr.bf16.mxu0 %v3441_v53  ;;  %v3160_v53 = vld [vmem:[%s4162_s3 + $0x30] sm:$0xff]  }
  0x89   : > { %1575 = vmatprep.mubr.bf16.mxu1 %v3443_v54  ;;  %v3161_v54 = vld [vmem:[%s4162_s3 + $0x68] sm:$0xff]  }
  0x8a   : > { %1461 = vmatpush2.bf16.msra.mxu0 %v3151_v6 }
  0x8b   : > { %1574 = vmatpush2.bf16.msra.mxu1 %v3154_v7  ;;  %2749 = vmatprep.subr.bf16.mxu0 %v3157_v8 }
  0x8d   : > { %1463 = vmatmul.mubr.bf16.vlgmr.msra.gmra.mxu0 %v3510_v16  ;;  %v3162_v16 = vld [vmem:[%s4162_s3 + $0x28] sm:$0xff]  }
  0x8e   : > { %1576 = vmatmul.mubr.bf16.vlgmr.msra.gmra.mxu1 %v3512_v17  ;;  %1472 = vmatprep.mubr.bf16.mxu0 %v3525_v23  ;;  %v3163_v17 = vld [vmem:[%s4162_s3 + $0x60] sm:$0xff]  }
  0x8f   : > { %1585 = vmatprep.mubr.bf16.mxu1 %v3527_v24  ;;  %2750 = vmatpush3.bf16.msra.mxu0 %v3158_v9  ;;  %v3164_v23 = vld [vmem:[%s4162_s3 + $0x20] sm:$0xff]   ;;  %v3165_v24 = vld [vmem:[%s4162_s3 + $0x58] sm:$0xff]  }
  0x90   : > { %2751 = vmatprep.subr.bf16.mxu0 %v3159_v10 }
  0x93   : > { %2752 = vmatpush3.bf16.msra.mxu0 %v3160_v53 }
  0x94   : > { %2753 = vmatprep.subr.bf16.mxu0 %v3161_v54 }
  0x95   : > { %1473 = vmatmul.mubr.bf16.gmra.mxu0 %v3554_v36  ;;  %v3166_v36 = vld [vmem:[%s4162_s3 + $0x18] sm:$0xff]  }
  0x96   : > { %1586 = vmatmul.mubr.bf16.gmra.mxu1 %v3556_v37  ;;  %1482 = vmatprep.mubr.bf16.mxu0 %v3569_v43  ;;  %v3167_v37 = vld [vmem:[%s4162_s3 + $0x50] sm:$0xff]  }
  0x97   : > { %1595 = vmatprep.mubr.bf16.mxu1 %v3571_v44  ;;  %2754 = vmatpush3.bf16.msra.mxu0 %v3162_v16  ;;  %v3168_v43 = vld [vmem:[%s4162_s3 + $0x10] sm:$0xff]   ;;  %v3169_v44 = vld [vmem:[%s4162_s3 + $0x48] sm:$0xff]  }
  0x98   : > { %2755 = vmatprep.subr.bf16.mxu0 %v3163_v17 }
  0x9b   : > { %2756 = vmatpush3.bf16.msra.mxu0 %v3164_v23 }
  0x9c   : > { %2757 = vmatprep.subr.bf16.mxu0 %v3165_v24 }
  0x9d   : > { %1483 = vmatmul.mubr.bf16.gmra.mxu0 %v3598_v58  ;;  %v3173_v58 = vld [vmem:[%s4162_s3 + $0xf8] sm:$0xff]  }
  0x9e   : > { %1596 = vmatmul.mubr.bf16.gmra.mxu1 %v3600_v59  ;;  %1492 = vmatprep.mubr.bf16.mxu0 %v3613_v1  ;;  %v3170_v59 = vld [vmem:[%s4162_s3 + $0x8] sm:$0xff]   ;;  %v3174_v1 = vld [vmem:[%s4162_s3 + $0xb8] sm:$0xff]  }
  0x9f   : > { %1605 = vmatprep.mubr.bf16.mxu1 %v3615_v2  ;;  %2758 = vmatpush3.bf16.msra.mxu0 %v3166_v36  ;;  %v3171_v2 = vld [vmem:[%s4162_s3 + $0x40] sm:$0xff]  }
  0xa0   : > { %2759 = vmatprep.subr.bf16.mxu0 %v3167_v37  ;;  %2813 = vmatprep.subr.bf16.mxu1 %v3173_v58 }
  0xa1   : > { %2814 = vmatpush3.bf16.msra.mxu1 %v3174_v1 }
  0xa2   : > { %2815 = vmatprep.subr.bf16.mxu1 %v3175_v18 }
  0xa3   : > { %2760 = vmatpush3.bf16.msra.mxu0 %v3168_v43 }
  0xa4   : > { %2761 = vmatprep.subr.bf16.mxu0 %v3169_v44 }
  0xa5   : > { %1493 = vmatmul.mubr.bf16.gmra.mxu0 %v3642_v14  ;;  %v3176_v14 = vld [vmem:[%s4162_s3 + $0xb0] sm:$0xff]  }
  0xa6   : > { %1606 = vmatmul.mubr.bf16.gmra.mxu1 %v3644_v15  ;;  %1502 = vmatprep.mubr.bf16.mxu0 %v3657_v25  ;;  %v3177_v15 = vld [vmem:[%s4162_s3 + $0xe8] sm:$0xff]  }
  0xa7   : > { %1615 = vmatprep.mubr.bf16.mxu1 %v3659_v26  ;;  %2762 = vmatpush3.bf16.msra.mxu0 %v3170_v59  ;;  %v3178_v25 = vld [vmem:[%s4162_s3 + $0xa8] sm:$0xff]   ;;  %v3179_v26 = vld [vmem:[%s4162_s3 + $0xe0] sm:$0xff]  }
  0xa8   : > { %2763 = vmatprep.subr.bf16.mxu0 %v3171_v2  ;;  %2816 = vmatpush3.bf16.msra.mxu1 %v3176_v14 }
  0xa9   : > { %2817 = vmatprep.subr.bf16.mxu1 %v3177_v15 }
  0xab   : > { %2764 = vmatpush3.bf16.msra.mxu0 %v3172_v11 }
  0xac   : > { %2818 = vmatpush3.bf16.msra.mxu1 %v3178_v25 }
  0xad   : > { %1503 = vmatmul.mubr.bf16.gmra.mxu0 %v3686_v40  ;;  %v3180_v40 = vld [vmem:[%s4162_s3 + $0xa0] sm:$0xff]   ;;  %2819 = vmatprep.subr.bf16.mxu1 %v3179_v26 }
  0xae   : > { %1616 = vmatmul.mubr.bf16.gmra.mxu1 %v3688_v41  ;;  %1512 = vmatprep.mubr.bf16.mxu0 %v3701_v49  ;;  %v3181_v41 = vld [vmem:[%s4162_s3 + $0xd8] sm:$0xff]  }
  0xaf   : > { %1625 = vmatprep.mubr.bf16.mxu1 %v3703_v50  ;;  %v3182_v49 = vld [vmem:[%s4162_s3 + $0x98] sm:$0xff]   ;;  %v3183_v50 = vld [vmem:[%s4162_s3 + $0xd0] sm:$0xff]  }
  0xb0   : > { %2820 = vmatpush3.bf16.msra.mxu1 %v3180_v40 }
  0xb1   : > { %2821 = vmatprep.subr.bf16.mxu1 %v3181_v41 }
  0xb4   : > { %2822 = vmatpush3.bf16.msra.mxu1 %v3182_v49 }
  0xb5   : > { %1513 = vmatmul.mubr.bf16.gmra.mxu0 %v3730_v4  ;;  %v3184_v4 = vld [vmem:[%s4162_s3 + $0x90] sm:$0xff]   ;;  %2823 = vmatprep.subr.bf16.mxu1 %v3183_v50 }
  0xb6   : > { %1626 = vmatmul.mubr.bf16.gmra.mxu1 %v3732_v5  ;;  %1522 = vmatprep.mubr.bf16.mxu0 %v3748_v12  ;;  %v3185_v5 = vld [vmem:[%s4162_s3 + $0xc8] sm:$0xff]  }
  0xb7   : > { %1635 = vmatprep.mubr.bf16.mxu1 %v3750_v13  ;;  %v3186_v12 = vld [vmem:[%s4162_s3 + $0x88] sm:$0xff]   ;;  %v3187_v13 = vld [vmem:[%s4162_s3 + $0xc0] sm:$0xff]  }
  0xb8   : > { %2824 = vmatpush3.bf16.msra.mxu1 %v3184_v4 }
  0xb9   : > { %2825 = vmatprep.subr.bf16.mxu1 %v3185_v5 }
  0xbc   : > { %2826 = vmatpush3.bf16.msra.mxu1 %v3186_v12 }
  0xbd   : > { %1523 = vmatmul.mubr.bf16.gmra.mxu0 %v3775_v33  ;;  %2827 = vmatprep.subr.bf16.mxu1 %v3187_v13 }
  0xbe   : > { %1636 = vmatmul.mubr.bf16.gmra.mxu1 %v3777_v34  ;;  %1532 = vmatprep.mubr.bf16.mxu0 %v3792_v46 }
  0xbf   : > { %1645 = vmatprep.mubr.bf16.mxu1 %v3794_v47 }
  0xc0   : > { %2828 = vmatpush3.bf16.msra.mxu1 %v3188_v19 }
  0xc5   : > { %1533 = vmatmul.mubr.bf16.gmra.mxu0 %v3816_v62 }
  0xc6   : > { %1646 = vmatmul.mubr.bf16.gmra.mxu1 %v3818_v63 }
 0x10d   : > { %v1238_v31 = vpop.f32.mrf.mxu0 }
 0x10e   : > { %v1351_v32 = vpop.f32.mrf.mxu1  ;;  %v1239_v38 = vadd.f32 %v1238_v31, %v3975_v30 }
 0x10f   : > { %v1240_v33 = vpop.f32.mrf.mxu0 }
 0x110   : > { %v1353_v34 = vpop.f32.mrf.mxu1  ;;  %v1241_v35 = vadd.f32 %v1240_v33, %v3972_v29  ;;  %v1352_v55 = vadd.f32 %v1351_v32, %v1239_v38 }
 0x111   : > { %v1242_v39 = vpop.f32.mrf.mxu0 }
 0x112   : > { %v1355_v42 = vpop.f32.mrf.mxu1  ;;  %v1243_v45 = vadd.f32 %v1242_v39, %v3975_v30  ;;  %v1354_v48 = vadd.f32 %v1353_v34, %v1241_v35  ;;  %v1656_v7 = vmax.f32 %v1352_v55, 0.0 }
 0x113   : > { %v1244_v46 = vpop.f32.mrf.mxu0 }
 0x114   : > { %v1357_v47 = vpop.f32.mrf.mxu1  ;;  %v1356_v51 = vadd.f32 %v1355_v42, %v1243_v45  ;;  %v1245_v52 = vadd.f32 %v1244_v46, %v3972_v29  ;;  %v1657_v0 = vmax.f32 %v1354_v48, 0.0 }
 0x115   : > { %v1248_v56 = vpop.f32.mrf.mxu0 }
 0x116   : > { %v1361_v57 = vpop.f32.mrf.mxu1  ;;  %v1358_v60 = vadd.f32 %v1357_v47, %v1245_v52  ;;  %v1660_v61 = vmax.f32 %v1356_v51, 0.0  ;;  %v1249_v8 = vadd.f32 %v1248_v56, %v3975_v30 }
 0x117   : > { %v1250_v62 = vpop.f32.mrf.mxu0 }
 0x118   : > { %v1363_v63 = vpop.f32.mrf.mxu1  ;;  %v1661_v3 = vmax.f32 %v1358_v60, 0.0  ;;  %v1251_v6 = vadd.f32 %v1250_v62, %v3972_v29  ;;  %v1736_v16 = vpack.c.bf16 %v1660_v61, %v1656_v7  ;;  %v1362_v43 = vadd.f32 %v1361_v57, %v1249_v8 }
 0x119   : > { %v1252_v9 = vpop.f32.mrf.mxu0 }
 0x11a   : > { %v1365_v10 = vpop.f32.mrf.mxu1  ;;  %v1737_v53 = vpack.c.bf16 %v1661_v3, %v1657_v0  ;;  %v1253_v54 = vadd.f32 %v1252_v9, %v3975_v30  ;;  %v1364_v24 = vadd.f32 %v1363_v63, %v1251_v6  ;;  %v1664_v25 = vmax.f32 %v1362_v43, 0.0 }
 0x11b   : > { %v1254_v17 = vpop.f32.mrf.mxu0 }
 0x11c   : > { %v1367_v23 = vpop.f32.mrf.mxu1  ;;  %v1366_v36 = vadd.f32 %v1365_v10, %v1253_v54  ;;  %v1255_v37 = vadd.f32 %v1254_v17, %v3972_v29  ;;  %2056 = vmatprep.mubr.bf16.mxu0 %v1737_v53  ;;  %v1665_v18 = vmax.f32 %v1364_v24, 0.0 }
 0x11d   : > { %v1258_v44 = vpop.f32.mrf.mxu0  ;;  %2057 = vmatmul.mubr.bf16.vlgmr.msra.gmra.mxu0 %v1736_v16 }
 0x11e   : > { %v1371_v58 = vpop.f32.mrf.mxu1  ;;  %v1368_v59 = vadd.f32 %v1367_v23, %v1255_v37  ;;  %v1668_v1 = vmax.f32 %v1366_v36, 0.0  ;;  %v1259_v26 = vadd.f32 %v1258_v44, %v3975_v30 }
 0x11f   : > { %v1260_v2 = vpop.f32.mrf.mxu0 }
 0x120   : > { %v1373_v11 = vpop.f32.mrf.mxu1  ;;  %v1669_v14 = vmax.f32 %v1368_v59, 0.0  ;;  %v1261_v15 = vadd.f32 %v1260_v2, %v3972_v29  ;;  %v1740_v4 = vpack.c.bf16 %v1668_v1, %v1664_v25  ;;  %v1372_v22 = vadd.f32 %v1371_v58, %v1259_v26 }
 0x121   : > { %v1262_v40 = vpop.f32.mrf.mxu0 }
 0x122   : > { %v1375_v41 = vpop.f32.mrf.mxu1  ;;  %v1741_v49 = vpack.c.bf16 %v1669_v14, %v1665_v18  ;;  %v1263_v50 = vadd.f32 %v1262_v40, %v3975_v30  ;;  %v1374_v13 = vadd.f32 %v1373_v11, %v1261_v15  ;;  %v1672_v45 = vmax.f32 %v1372_v22, 0.0 }
 0x123   : > { %v1264_v5 = vpop.f32.mrf.mxu0 }
 0x124   : > { %v1377_v12 = vpop.f32.mrf.mxu1  ;;  %v1376_v19 = vadd.f32 %v1375_v41, %v1263_v50  ;;  %v1265_v20 = vadd.f32 %v1264_v5, %v3972_v29  ;;  %2064 = vmatprep.mubr.bf16.mxu0 %v1741_v49  ;;  %v1673_v38 = vmax.f32 %v1374_v13, 0.0 }
 0x125   : > { %v1268_v27 = vpop.f32.mrf.mxu0  ;;  %2065 = vmatmul.mubr.bf16.gmra.mxu0 %v1740_v4 }
 0x126   : > { %v1381_v31 = vpop.f32.mrf.mxu1  ;;  %v1378_v32 = vadd.f32 %v1377_v12, %v1265_v20  ;;  %v1676_v33 = vmax.f32 %v1376_v19, 0.0  ;;  %v1269_v46 = vadd.f32 %v1268_v27, %v3975_v30 }
 0x127   : > { %v1270_v34 = vpop.f32.mrf.mxu0 }
 0x128   : > { %v1383_v35 = vpop.f32.mrf.mxu1  ;;  %v1677_v39 = vmax.f32 %v1378_v32, 0.0  ;;  %v1271_v42 = vadd.f32 %v1270_v34, %v3972_v29  ;;  %v1744_v55 = vpack.c.bf16 %v1676_v33, %v1672_v45  ;;  %v1382_v63 = vadd.f32 %v1381_v31, %v1269_v46 }
 0x129   : > { %v1272_v47 = vpop.f32.mrf.mxu0 }
 0x12a   : > { %v1385_v48 = vpop.f32.mrf.mxu1  ;;  %v1745_v51 = vpack.c.bf16 %v1677_v39, %v1673_v38  ;;  %v1273_v52 = vadd.f32 %v1272_v47, %v3975_v30  ;;  %v1384_v60 = vadd.f32 %v1383_v35, %v1271_v42  ;;  %v1680_v16 = vmax.f32 %v1382_v63, 0.0 }
 0x12b   : > { %v1274_v56 = vpop.f32.mrf.mxu0 }
 0x12c   : > { %v1387_v57 = vpop.f32.mrf.mxu1  ;;  %v1386_v61 = vadd.f32 %v1385_v48, %v1273_v52  ;;  %v1275_v62 = vadd.f32 %v1274_v56, %v3972_v29  ;;  %2072 = vmatprep.mubr.bf16.mxu0 %v1745_v51  ;;  %v1681_v10 = vmax.f32 %v1384_v60, 0.0 }
 0x12d   : > { %v1278_v0 = vpop.f32.mrf.mxu0  ;;  %2073 = vmatmul.mubr.bf16.gmra.mxu0 %v1744_v55 }
 0x12e   : > { %v1391_v3 = vpop.f32.mrf.mxu1  ;;  %v1388_v6 = vadd.f32 %v1387_v57, %v1275_v62  ;;  %v1684_v7 = vmax.f32 %v1386_v61, 0.0  ;;  %v1279_v17 = vadd.f32 %v1278_v0, %v3975_v30 }
 0x12f   : > { %v1280_v8 = vpop.f32.mrf.mxu0 }
 0x130   : > { %v1393_v9 = vpop.f32.mrf.mxu1  ;;  %v1685_v53 = vmax.f32 %v1388_v6, 0.0  ;;  %v1281_v54 = vadd.f32 %v1280_v8, %v3972_v29  ;;  %v1748_v43 = vpack.c.bf16 %v1684_v7, %v1680_v16  ;;  %v1392_v11 = vadd.f32 %v1391_v3, %v1279_v17 }
 0x131   : > { %v1282_v23 = vpop.f32.mrf.mxu0 }
 0x132   : > { %v1395_v24 = vpop.f32.mrf.mxu1  ;;  %v1749_v36 = vpack.c.bf16 %v1685_v53, %v1681_v10  ;;  %v1283_v37 = vadd.f32 %v1282_v23, %v3975_v30  ;;  %v1394_v59 = vadd.f32 %v1393_v9, %v1281_v54  ;;  %v1688_v4 = vmax.f32 %v1392_v11, 0.0 }
 0x133   : > { %v1284_v44 = vpop.f32.mrf.mxu0 }
 0x134   : > { %v1397_v58 = vpop.f32.mrf.mxu1  ;;  %v1396_v1 = vadd.f32 %v1395_v24, %v1283_v37  ;;  %v1285_v2 = vadd.f32 %v1284_v44, %v3972_v29  ;;  %2080 = vmatprep.mubr.bf16.mxu0 %v1749_v36  ;;  %v1689_v41 = vmax.f32 %v1394_v59, 0.0 }
 0x135   : > { %v1288_v18 = vpop.f32.mrf.mxu0  ;;  %2081 = vmatmul.mubr.bf16.gmra.mxu0 %v1748_v43  ;;  %v558_v43 = vsub.s32 3, %v3962_v21 }
 0x136   : > { %v1401_v14 = vpop.f32.mrf.mxu1  ;;  %v1398_v15 = vadd.f32 %v1397_v58, %v1285_v2  ;;  %v1692_v25 = vmax.f32 %v1396_v1, 0.0  ;;  %v1289_v5 = vadd.f32 %v1288_v18, %v3975_v30  ;;  %v554_v2 = vsub.s32 2, %v3962_v21 }
 0x137   : > { %v1290_v26 = vpop.f32.mrf.mxu0 }
 0x138   : > { %v1403_v40 = vpop.f32.mrf.mxu1  ;;  %v1693_v49 = vmax.f32 %v1398_v15, 0.0  ;;  %v1291_v50 = vadd.f32 %v1290_v26, %v3972_v29  ;;  %v1752_v22 = vpack.c.bf16 %v1692_v25, %v1688_v4  ;;  %v1402_v35 = vadd.f32 %v1401_v14, %v1289_v5 }
 0x139   : > { %v1292_v12 = vpop.f32.mrf.mxu0  ;;  %v4015_v4 = vrot.slane %v3969_v28, %v554_v2 }
 0x13a   : > { %v1405_v13 = vpop.f32.mrf.mxu1  ;;  %v1753_v19 = vpack.c.bf16 %v1693_v49, %v1689_v41  ;;  %v1293_v20 = vadd.f32 %v1292_v12, %v3975_v30  ;;  %v1404_v32 = vadd.f32 %v1403_v40, %v1291_v50  ;;  %v1696_v55 = vmax.f32 %v1402_v35, 0.0 }
 0x13b   : > { %v1294_v27 = vpop.f32.mrf.mxu0  ;;  %v4012_v49 = vrot.slane %v3969_v28, %v558_v43 }
 0x13c   : > { %v1407_v31 = vpop.f32.mrf.mxu1  ;;  %v1406_v33 = vadd.f32 %v1405_v13, %v1293_v20  ;;  %v1295_v34 = vadd.f32 %v1294_v27, %v3972_v29  ;;  %2088 = vmatprep.mubr.bf16.mxu0 %v1753_v19  ;;  %v1697_v48 = vmax.f32 %v1404_v32, 0.0 }
 0x13d   : > { %v1298_v38 = vpop.f32.mrf.mxu0  ;;  %2089 = vmatmul.mubr.bf16.gmra.mxu0 %v1752_v22 }
 0x13e   : > { %v1411_v39 = vpop.f32.mrf.mxu1  ;;  %v1408_v42 = vadd.f32 %v1407_v31, %v1295_v34  ;;  %v1700_v45 = vmax.f32 %v1406_v33, 0.0  ;;  %v1299_v56 = vadd.f32 %v1298_v38, %v3975_v30 }
 0x13f   : > { %v1300_v46 = vpop.f32.mrf.mxu0 }
 0x140   : > { %v1413_v47 = vpop.f32.mrf.mxu1  ;;  %v1701_v51 = vmax.f32 %v1408_v42, 0.0  ;;  %v1301_v52 = vadd.f32 %v1300_v46, %v3972_v29  ;;  %v1756_v63 = vpack.c.bf16 %v1700_v45, %v1696_v55  ;;  %v1412_v9 = vadd.f32 %v1411_v39, %v1299_v56 }
 0x141   : > { %v1302_v57 = vpop.f32.mrf.mxu0 }
 0x142   : > { %v1415_v60 = vpop.f32.mrf.mxu1  ;;  %v1757_v61 = vpack.c.bf16 %v1701_v51, %v1697_v48  ;;  %v1303_v62 = vadd.f32 %v1302_v57, %v3975_v30  ;;  %v1414_v6 = vadd.f32 %v1413_v47, %v1301_v52  ;;  %v1704_v44 = vmax.f32 %v1412_v9, 0.0 }
 0x143   : > { %v1304_v0 = vpop.f32.mrf.mxu0 }
 0x144   : > { %v1417_v3 = vpop.f32.mrf.mxu1  ;;  %v1416_v7 = vadd.f32 %v1415_v60, %v1303_v62  ;;  %v1305_v8 = vadd.f32 %v1304_v0, %v3972_v29  ;;  %2096 = vmatprep.mubr.bf16.mxu0 %v1757_v61  ;;  %v1705_v24 = vmax.f32 %v1414_v6, 0.0 }
 0x145   : > { %v1308_v10 = vpop.f32.mrf.mxu0  ;;  %2097 = vmatmul.mubr.bf16.gmra.mxu0 %v1756_v63 }
 0x146   : > { %v1421_v53 = vpop.f32.mrf.mxu1  ;;  %v1418_v54 = vadd.f32 %v1417_v3, %v1305_v8  ;;  %v1708_v16 = vmax.f32 %v1416_v7, 0.0  ;;  %v1309_v58 = vadd.f32 %v1308_v10, %v3975_v30 }
 0x147   : > { %v1310_v17 = vpop.f32.mrf.mxu0 }
 0x148   : > { %v1423_v23 = vpop.f32.mrf.mxu1  ;;  %v1709_v36 = vmax.f32 %v1418_v54, 0.0  ;;  %v1311_v37 = vadd.f32 %v1310_v17, %v3972_v29  ;;  %v1760_v14 = vpack.c.bf16 %v1708_v16, %v1704_v44  ;;  %v1422_v50 = vadd.f32 %v1421_v53, %v1309_v58 }
 0x149   : > { %v1312_v59 = vpop.f32.mrf.mxu0 }
 0x14a   : > { %v1425_v1 = vpop.f32.mrf.mxu1  ;;  %v1761_v11 = vpack.c.bf16 %v1709_v36, %v1705_v24  ;;  %v1313_v18 = vadd.f32 %v1312_v59, %v3975_v30  ;;  %v1424_v26 = vadd.f32 %v1423_v23, %v1311_v37 }
 0x14b   : > { %v1314_v15 = vpop.f32.mrf.mxu0 }
 0x14c   : > { %v1427_v25 = vpop.f32.mrf.mxu1  ;;  %v1426_v40 = vadd.f32 %v1425_v1, %v1313_v18  ;;  %v1315_v41 = vadd.f32 %v1314_v15, %v3972_v29  ;;  %2104 = vmatprep.mubr.bf16.mxu0 %v1761_v11  ;;  %v1713_v20 = vmax.f32 %v1424_v26, 0.0  ;;  %v1712_v29 = vmax.f32 %v1422_v50, 0.0 }
 0x14d   : > { %v1464_v5 = vpop.f32.mrf.mxu0  ;;  %2105 = vmatmul.mubr.bf16.gmra.mxu0 %v1760_v14 }
 0x14e   : > { %v1577_v21 = vpop.f32.mrf.mxu1  ;;  %v1428_v12 = vadd.f32 %v1427_v25, %v1315_v41  ;;  %v1716_v30 = vmax.f32 %v1426_v40, 0.0  ;;  %v1465_v31 = vadd.f32 %v1464_v5, %v4015_v4 }
 0x14f   : > { %v1466_v13 = vpop.f32.mrf.mxu0 }
 0x150   : > { %v1579_v19 = vpop.f32.mrf.mxu1  ;;  %v1717_v22 = vmax.f32 %v1428_v12, 0.0  ;;  %v1467_v27 = vadd.f32 %v1466_v13, %v4012_v49  ;;  %v1764_v35 = vpack.c.bf16 %v1716_v30, %v1712_v29  ;;  %v1578_v47 = vadd.f32 %v1577_v21, %v1465_v31 }
 0x151   : > { %v1468_v32 = vpop.f32.mrf.mxu0 }
 0x152   : > { %v1581_v33 = vpop.f32.mrf.mxu1  ;;  %v1765_v34 = vpack.c.bf16 %v1717_v22, %v1713_v20  ;;  %v1469_v28 = vadd.f32 %v1468_v32, %v4015_v4  ;;  %v1580_v42 = vadd.f32 %v1579_v19, %v1467_v27  ;;  %v1658_v63 = vmax.f32 %v1578_v47, 0.0 }
 0x153   : > { %v1470_v38 = vpop.f32.mrf.mxu0 }
 0x154   : > { %v1583_v39 = vpop.f32.mrf.mxu1  ;;  %v1582_v45 = vadd.f32 %v1581_v33, %v1469_v28  ;;  %v1471_v46 = vadd.f32 %v1470_v38, %v4012_v49  ;;  %2112 = vmatprep.mubr.bf16.mxu0 %v1765_v34  ;;  %v1659_v60 = vmax.f32 %v1580_v42, 0.0 }
 0x155   : > { %v1474_v48 = vpop.f32.mrf.mxu0  ;;  %2113 = vmatmul.mubr.bf16.gmra.mxu0 %v1764_v35 }
 0x156   : > { %v1587_v51 = vpop.f32.mrf.mxu1  ;;  %v1584_v52 = vadd.f32 %v1583_v39, %v1471_v46  ;;  %v1662_v55 = vmax.f32 %v1582_v45, 0.0  ;;  %v1475_v0 = vadd.f32 %v1474_v48, %v4015_v4 }
 0x157   : > { %v1476_v56 = vpop.f32.mrf.mxu0 }
 0x158   : > { %v1589_v57 = vpop.f32.mrf.mxu1  ;;  %v1663_v61 = vmax.f32 %v1584_v52, 0.0  ;;  %v1477_v62 = vadd.f32 %v1476_v56, %v4012_v49  ;;  %v1738_v9 = vpack.c.bf16 %v1662_v55, %v1658_v63  ;;  %v1588_v23 = vadd.f32 %v1587_v51, %v1475_v0 }
 0x159   : > { %v1478_v3 = vpop.f32.mrf.mxu0 }
 0x15a   : > { %v1591_v6 = vpop.f32.mrf.mxu1  ;;  %v1739_v7 = vpack.c.bf16 %v1663_v61, %v1659_v60  ;;  %v1479_v8 = vadd.f32 %v1478_v3, %v4015_v4  ;;  %v1590_v54 = vadd.f32 %v1589_v57, %v1477_v62  ;;  %v1666_v11 = vmax.f32 %v1588_v23, 0.0 }
 0x15b   : > { %v1480_v10 = vpop.f32.mrf.mxu0 }
 0x15c   : > { %v1593_v53 = vpop.f32.mrf.mxu1  ;;  %v1592_v16 = vadd.f32 %v1591_v6, %v1479_v8  ;;  %v1481_v17 = vadd.f32 %v1480_v10, %v4012_v49  ;;  %2153 = vmatprep.mubr.bf16.mxu1 %v1739_v7  ;;  %v1667_v59 = vmax.f32 %v1590_v54, 0.0 }
 0x15d   : > { %v1484_v24 = vpop.f32.mrf.mxu0  ;;  %2154 = vmatmul.mubr.bf16.vlgmr.msra.gmra.mxu1 %v1738_v9 }
 0x15e   : > { %v1597_v36 = vpop.f32.mrf.mxu1  ;;  %v1594_v37 = vadd.f32 %v1593_v53, %v1481_v17  ;;  %v1670_v43 = vmax.f32 %v1592_v16, 0.0  ;;  %v1485_v18 = vadd.f32 %v1484_v24, %v4015_v4 }
 0x15f   : > { %v1486_v44 = vpop.f32.mrf.mxu0 }
 0x160   : > { %v1599_v58 = vpop.f32.mrf.mxu1  ;;  %v1671_v1 = vmax.f32 %v1594_v37, 0.0  ;;  %v1487_v2 = vadd.f32 %v1486_v44, %v4012_v49  ;;  %v1742_v40 = vpack.c.bf16 %v1670_v43, %v1666_v11  ;;  %v1598_v30 = vadd.f32 %v1597_v36, %v1485_v18 }
 0x161   : > { %v1488_v14 = vpop.f32.mrf.mxu0 }
 0x162   : > { %v1601_v15 = vpop.f32.mrf.mxu1  ;;  %v1743_v25 = vpack.c.bf16 %v1671_v1, %v1667_v59  ;;  %v1489_v26 = vadd.f32 %v1488_v14, %v4015_v4  ;;  %v1600_v5 = vadd.f32 %v1599_v58, %v1487_v2  ;;  %v1674_v34 = vmax.f32 %v1598_v30, 0.0 }
 0x163   : > { %v1490_v41 = vpop.f32.mrf.mxu0 }
 0x164   : > { %v1603_v50 = vpop.f32.mrf.mxu1  ;;  %v1602_v21 = vadd.f32 %v1601_v15, %v1489_v26  ;;  %v1491_v12 = vadd.f32 %v1490_v41, %v4012_v49  ;;  %2161 = vmatprep.mubr.bf16.mxu1 %v1743_v25  ;;  %v1675_v31 = vmax.f32 %v1600_v5, 0.0 }
 0x165   : > { %v1494_v13 = vpop.f32.mrf.mxu0  ;;  %2162 = vmatmul.mubr.bf16.gmra.mxu1 %v1742_v40 }
 0x166   : > { %v1607_v19 = vpop.f32.mrf.mxu1  ;;  %v1604_v20 = vadd.f32 %v1603_v50, %v1491_v12  ;;  %v1678_v22 = vmax.f32 %v1602_v21, 0.0  ;;  %v1495_v28 = vadd.f32 %v1494_v13, %v4015_v4 }
 0x167   : > { %v1496_v27 = vpop.f32.mrf.mxu0 }
 0x168   : > { %v1609_v29 = vpop.f32.mrf.mxu1  ;;  %v1679_v32 = vmax.f32 %v1604_v20, 0.0  ;;  %v1497_v33 = vadd.f32 %v1496_v27, %v4012_v49  ;;  %v1746_v45 = vpack.c.bf16 %v1678_v22, %v1674_v34  ;;  %v1608_v55 = vadd.f32 %v1607_v19, %v1495_v28 }
 0x169   : > { %v1498_v35 = vpop.f32.mrf.mxu0 }
 0x16a   : > { %v1611_v38 = vpop.f32.mrf.mxu1  ;;  %v1747_v39 = vpack.c.bf16 %v1679_v32, %v1675_v31  ;;  %v1499_v42 = vadd.f32 %v1498_v35, %v4015_v4  ;;  %v1610_v48 = vadd.f32 %v1609_v29, %v1497_v33  ;;  %v1682_v7 = vmax.f32 %v1608_v55, 0.0 }
 0x16b   : > { %v1500_v46 = vpop.f32.mrf.mxu0 }
 0x16c   : > { %v1613_v47 = vpop.f32.mrf.mxu1  ;;  %v1612_v51 = vadd.f32 %v1611_v38, %v1499_v42  ;;  %v1501_v52 = vadd.f32 %v1500_v46, %v4012_v49  ;;  %2169 = vmatprep.mubr.bf16.mxu1 %v1747_v39  ;;  %v1683_v0 = vmax.f32 %v1610_v48, 0.0 }
 0x16d   : > { %v1504_v56 = vpop.f32.mrf.mxu0  ;;  %2170 = vmatmul.mubr.bf16.gmra.mxu1 %v1746_v45 }
 0x16e   : > { %v1617_v57 = vpop.f32.mrf.mxu1  ;;  %v1614_v60 = vadd.f32 %v1613_v47, %v1501_v52  ;;  %v1686_v61 = vmax.f32 %v1612_v51, 0.0  ;;  %v1505_v8 = vadd.f32 %v1504_v56, %v4015_v4 }
 0x16f   : > { %v1506_v62 = vpop.f32.mrf.mxu0 }
 0x170   : > { %v1619_v63 = vpop.f32.mrf.mxu1  ;;  %v1687_v3 = vmax.f32 %v1614_v60, 0.0  ;;  %v1507_v6 = vadd.f32 %v1506_v62, %v4012_v49  ;;  %v1750_v16 = vpack.c.bf16 %v1686_v61, %v1682_v7  ;;  %v1618_v43 = vadd.f32 %v1617_v57, %v1505_v8 }
 0x171   : > { %v1508_v9 = vpop.f32.mrf.mxu0 }
 0x172   : > { %v1621_v10 = vpop.f32.mrf.mxu1  ;;  %v1751_v53 = vpack.c.bf16 %v1687_v3, %v1683_v0  ;;  %v1509_v54 = vadd.f32 %v1508_v9, %v4015_v4  ;;  %v1620_v24 = vadd.f32 %v1619_v63, %v1507_v6  ;;  %v1690_v25 = vmax.f32 %v1618_v43, 0.0 }
 0x173   : > { %v1510_v17 = vpop.f32.mrf.mxu0 }
 0x174   : > { %v1623_v23 = vpop.f32.mrf.mxu1  ;;  %v1622_v36 = vadd.f32 %v1621_v10, %v1509_v54  ;;  %v1511_v37 = vadd.f32 %v1510_v17, %v4012_v49  ;;  %2177 = vmatprep.mubr.bf16.mxu1 %v1751_v53  ;;  %v1691_v18 = vmax.f32 %v1620_v24, 0.0 }
 0x175   : > { %v1514_v44 = vpop.f32.mrf.mxu0  ;;  %2178 = vmatmul.mubr.bf16.gmra.mxu1 %v1750_v16 }
 0x176   : > { %v1627_v58 = vpop.f32.mrf.mxu1  ;;  %v1624_v59 = vadd.f32 %v1623_v23, %v1511_v37  ;;  %v1694_v1 = vmax.f32 %v1622_v36, 0.0  ;;  %v1515_v26 = vadd.f32 %v1514_v44, %v4015_v4 }
 0x177   : > { %v1516_v2 = vpop.f32.mrf.mxu0 }
 0x178   : > { %v1629_v11 = vpop.f32.mrf.mxu1  ;;  %v1695_v14 = vmax.f32 %v1624_v59, 0.0  ;;  %v1517_v15 = vadd.f32 %v1516_v2, %v4012_v49  ;;  %v1754_v21 = vpack.c.bf16 %v1694_v1, %v1690_v25  ;;  %v1628_v22 = vadd.f32 %v1627_v58, %v1515_v26 }
 0x179   : > { %v1518_v40 = vpop.f32.mrf.mxu0 }
 0x17a   : > { %v1631_v41 = vpop.f32.mrf.mxu1  ;;  %v1755_v50 = vpack.c.bf16 %v1695_v14, %v1691_v18  ;;  %v1519_v5 = vadd.f32 %v1518_v40, %v4015_v4  ;;  %v1630_v13 = vadd.f32 %v1629_v11, %v1517_v15  ;;  %v1698_v39 = vmax.f32 %v1628_v22, 0.0  ;;  %v3191_v40 = vld [vmem:[%s4164_s5 + $0x28] sm:$0xff]  }
 0x17b   : > { %v1520_v12 = vpop.f32.mrf.mxu0 }
 0x17c   : > { %v1633_v30 = vpop.f32.mrf.mxu1  ;;  %v1632_v19 = vadd.f32 %v1631_v41, %v1519_v5  ;;  %v1521_v20 = vadd.f32 %v1520_v12, %v4012_v49  ;;  %2185 = vmatprep.mubr.bf16.mxu1 %v1755_v50  ;;  %v1699_v28 = vmax.f32 %v1630_v13, 0.0  ;;  %v3192_v41 = vld [vmem:[%s4164_s5 + $0x20] sm:$0xff]   ;;  %v3193_v50 = vld [vmem:[%s4164_s5 + $0x18] sm:$0xff]   ;;  %v3194_v5 = vld [vmem:[%s4164_s5 + $0x10] sm:$0xff]  }
 0x17d   : > { %v1524_v27 = vpop.f32.mrf.mxu0  ;;  %2186 = vmatmul.mubr.bf16.gmra.mxu1 %v1754_v21  ;;  %v3195_v21 = vld [vmem:[%s4164_s5 + $0x8] sm:$0xff]   ;;  %v3196_v12 = vld [vmem:[%s4164_s5] sm:$0xff]  }
 0x17e   : > { %v1637_v29 = vpop.f32.mrf.mxu1  ;;  %v1634_v31 = vadd.f32 %v1633_v30, %v1521_v20  ;;  %v1702_v32 = vmax.f32 %v1632_v19, 0.0  ;;  %v1525_v42 = vadd.f32 %v1524_v27, %v4015_v4 }
 0x17f   : > { %v1526_v33 = vpop.f32.mrf.mxu0 }
 0x180   : > { %v1639_v34 = vpop.f32.mrf.mxu1  ;;  %v1703_v35 = vmax.f32 %v1634_v31, 0.0  ;;  %v1527_v38 = vadd.f32 %v1526_v33, %v4012_v49  ;;  %v1758_v51 = vpack.c.bf16 %v1702_v32, %v1698_v39  ;;  %v1638_v61 = vadd.f32 %v1637_v29, %v1525_v42 }
 0x181   : > { %v1528_v45 = vpop.f32.mrf.mxu0 }
 0x182   : > { %v1641_v46 = vpop.f32.mrf.mxu1  ;;  %v1759_v47 = vpack.c.bf16 %v1703_v35, %v1699_v28  ;;  %v1529_v48 = vadd.f32 %v1528_v45, %v4015_v4  ;;  %v1640_v56 = vadd.f32 %v1639_v34, %v1527_v38  ;;  %v1706_v53 = vmax.f32 %v1638_v61, 0.0 }
 0x183   : > { %v1530_v52 = vpop.f32.mrf.mxu0 }
 0x184   : > { %v1643_v55 = vpop.f32.mrf.mxu1  ;;  %v1642_v57 = vadd.f32 %v1641_v46, %v1529_v48  ;;  %v1531_v60 = vadd.f32 %v1530_v52, %v4012_v49  ;;  %2193 = vmatprep.mubr.bf16.mxu1 %v1759_v47  ;;  %v1707_v8 = vmax.f32 %v1640_v56, 0.0 }
 0x185   : > { %v1534_v62 = vpop.f32.mrf.mxu0  ;;  %2194 = vmatmul.mubr.bf16.gmra.mxu1 %v1758_v51 }
 0x186   : > { %v1647_v63 = vpop.f32.mrf.mxu1  ;;  %v1644_v0 = vadd.f32 %v1643_v55, %v1531_v60  ;;  %v1710_v3 = vmax.f32 %v1642_v57, 0.0  ;;  %v1535_v54 = vadd.f32 %v1534_v62, %v4015_v4  ;;  %v4084_v57 = vld [vmem:[%s4163_s4] ss:$0 sm:$0xff] }
 0x187   : > { %v1536_v6 = vpop.f32.mrf.mxu0 }
 0x188   : > { %v1649_v7 = vpop.f32.mrf.mxu1  ;;  %v1711_v9 = vmax.f32 %v1644_v0, 0.0  ;;  %v1537_v10 = vadd.f32 %v1536_v6, %v4012_v49  ;;  %v1762_v36 = vpack.c.bf16 %v1710_v3, %v1706_v53  ;;  %v1648_v59 = vadd.f32 %v1647_v63, %v1535_v54 }
 0x189   : > { %v1538_v16 = vpop.f32.mrf.mxu0 }
 0x18a   : > { %v1651_v17 = vpop.f32.mrf.mxu1  ;;  %v1763_v23 = vpack.c.bf16 %v1711_v9, %v1707_v8  ;;  %v1539_v24 = vadd.f32 %v1538_v16, %v4015_v4  ;;  %v1650_v43 = vadd.f32 %v1649_v7, %v1537_v10  ;;  %v1714_v15 = vmax.f32 %v1648_v59, 0.0  ;;  %v3189_v4 = vld [vmem:[%s4164_s5 + $0x38] sm:$0xff]  }
 0x18b   : > { %v1540_v37 = vpop.f32.mrf.mxu0  ;;  %2893 = vmatprep.subr.bf16.mxu0 %v3189_v4  ;;  %2925 = vmatprep.subr.bf16.mxu1 %v3189_v4 }
 0x18c   : > { %v1652_v44 = vadd.f32 %v1651_v17, %v1539_v24  ;;  %v1541_v58 = vadd.f32 %v1540_v37, %v4012_v49  ;;  %2201 = vmatprep.mubr.bf16.mxu1 %v1763_v23  ;;  %v1653_v1 = vpop.f32.mrf.mxu1  ;;  %v1715_v18 = vmax.f32 %v1650_v43, 0.0  ;;  %2894 = vmatpush3.bf16.msra.mxu0 %v3189_v4  ;;  %v3190_v49 = vld [vmem:[%s4164_s5 + $0x30] sm:$0xff]  }
 0x18d   : > { %2202 = vmatmul.mubr.bf16.gmra.mxu1 %v1762_v36  ;;  %2895 = vmatprep.subr.bf16.mxu0 %v3190_v49 }
 0x18e   : > { %v1654_v2 = vadd.f32 %v1653_v1, %v1541_v58  ;;  %v1718_v11 = vmax.f32 %v1652_v44, 0.0  ;;  %2933 = vmatpush3.bf16.msra.mxu1 %v3189_v4 }
 0x18f   : > { %2926 = vmatprep.subr.bf16.mxu1 %v3190_v49 }
 0x190   : > { %v1719_v14 = vmax.f32 %v1654_v2, 0.0  ;;  %v1766_v26 = vpack.c.bf16 %v1718_v11, %v1714_v15  ;;  %2896 = vmatpush3.bf16.msra.mxu0 %v3190_v49 }
 0x191   : > { %2897 = vmatprep.subr.bf16.mxu0 %v3191_v40 }
 0x192   : > { %v1767_v25 = vpack.c.bf16 %v1719_v14, %v1715_v18  ;;  %2934 = vmatpush3.bf16.msra.mxu1 %v3190_v49 }
 0x193   : > { %2927 = vmatprep.subr.bf16.mxu1 %v3191_v40 }
 0x194   : > { %2209 = vmatprep.mubr.bf16.mxu1 %v1767_v25  ;;  %2898 = vmatpush3.bf16.msra.mxu0 %v3191_v40 }
 0x195   : > { %2210 = vmatmul.mubr.bf16.gmra.mxu1 %v1766_v26  ;;  %2899 = vmatprep.subr.bf16.mxu0 %v3192_v41 }
 0x196   : > { %2935 = vmatpush3.bf16.msra.mxu1 %v3191_v40 }
 0x197   : > { %2928 = vmatprep.subr.bf16.mxu1 %v3192_v41 }
 0x198   : > { %2900 = vmatpush3.bf16.msra.mxu0 %v3192_v41 }
 0x199   : > { %2901 = vmatprep.subr.bf16.mxu0 %v3193_v50 }
 0x19a   : > { %2936 = vmatpush3.bf16.msra.mxu1 %v3192_v41 }
 0x19b   : > { %2929 = vmatprep.subr.bf16.mxu1 %v3193_v50 }
 0x19c   : > { %2902 = vmatpush3.bf16.msra.mxu0 %v3193_v50 }
 0x19d   : > { %2903 = vmatprep.subr.bf16.mxu0 %v3194_v5 }
 0x19e   : > { %2937 = vmatpush3.bf16.msra.mxu1 %v3193_v50 }
 0x19f   : > { %2930 = vmatprep.subr.bf16.mxu1 %v3194_v5 }
 0x1a0   : > { %2904 = vmatpush3.bf16.msra.mxu0 %v3194_v5 }
 0x1a1   : > { %2905 = vmatprep.subr.bf16.mxu0 %v3195_v21 }
 0x1a2   : > { %2938 = vmatpush3.bf16.msra.mxu1 %v3194_v5 }
 0x1a3   : > { %2931 = vmatprep.subr.bf16.mxu1 %v3195_v21 }
 0x1a4   : > { %2906 = vmatpush3.bf16.msra.mxu0 %v3195_v21 }
 0x1a5   : > { %2907 = vmatprep.subr.bf16.mxu0 %v3196_v12 }
 0x1a6   : > { %2939 = vmatpush3.bf16.msra.mxu1 %v3195_v21 }
 0x1a7   : > { %2932 = vmatprep.subr.bf16.mxu1 %v3196_v12 }
 0x1a8   : > { %2908 = vmatpush3.bf16.msra.mxu0 %v3196_v12 }
 0x1aa   : > { %2940 = vmatpush3.bf16.msra.mxu1 %v3196_v12 }
 0x1dd   : > { %v2765_v30 = vpop.f32.mrf.mxu0 }
 0x1df   : > { %v2766_v13 = vpop.f32.mrf.mxu0 }
 0x1e0   : > { %v2767_v48 = vadd.f32 %v2766_v13, %v2765_v30 }
 0x1e1   : > { %v2768_v19 = vpop.f32.mrf.mxu0 }
 0x1e3   : > { %v2769_v20 = vpop.f32.mrf.mxu0 }
 0x1e4   : > { %v2770_v61 = vadd.f32 %v2769_v20, %v2768_v19 }
 0x1e5   : > { %v2771_v22 = vpop.f32.mrf.mxu0 }
 0x1e7   : > { %v2772_v27 = vpop.f32.mrf.mxu0 }
 0x1e8   : > { %v2773_v8 = vadd.f32 %v2772_v27, %v2771_v22 }
 0x1e9   : > { %v2774_v29 = vpop.f32.mrf.mxu0 }
 0x1eb   : > { %v2775_v31 = vpop.f32.mrf.mxu0 }
 0x1ec   : > { %v2776_v36 = vadd.f32 %v2775_v31, %v2774_v29 }
 0x1ed   : > { %v2777_v32 = vpop.f32.mrf.mxu0 }
 0x1ef   : > { %v2778_v33 = vpop.f32.mrf.mxu0 }
 0x1f0   : > { %v2779_v11 = vadd.f32 %v2778_v33, %v2777_v32 }
 0x1f1   : > { %v2780_v34 = vpop.f32.mrf.mxu0 }
 0x1f3   : > { %v2781_v28 = vpop.f32.mrf.mxu0 }
 0x1f4   : > { %v2782_v41 = vadd.f32 %v2781_v28, %v2780_v34 }
 0x1f5   : > { %v2783_v35 = vpop.f32.mrf.mxu0 }
 0x1f7   : > { %v2784_v38 = vpop.f32.mrf.mxu0 }
 0x1f8   : > { %v2785_v20 = vadd.f32 %v2784_v38, %v2783_v35 }
 0x1f9   : > { %v4073_v39 = vpop.f32.mrf.mxu0 }
 0x1fb   : > { %v4075_v42 = vpop.f32.mrf.mxu0 }
 0x1fc   : > { %v2788_v34 = vadd.f32 %v4075_v42, %v4073_v39 }
 0x1fd   : > { %v4077_v45 = vpop.f32.mrf.mxu0 }
 0x1ff   : > { %v4079_v52 = vpop.f32.mrf.mxu0 }
 0x200   : > { %v2791_v38 = vadd.f32 %v4079_v52, %v4077_v45 }
 0x201   : > { %v4086_v63 = vpop.f32.mrf.mxu0 }
 0x203   : > { %v2793_v53 = vpop.f32.mrf.mxu0 }
 0x205   : > { %v2795_v44 = vpop.f32.mrf.mxu0 }
 0x207   : > { %v2796_v15 = vpop.f32.mrf.mxu0 }
 0x208   : > { %v2797_v52 = vadd.f32 %v2796_v15, %v2795_v44 }
 0x209   : > { %v2798_v21 = vpop.f32.mrf.mxu0 }
 0x20b   : > { %v2799_v29 = vpop.f32.mrf.mxu0 }
 0x21d   : > { %v2829_v46 = vpop.f32.mrf.mxu1 }
 0x21f   : > { %v2830_v47 = vpop.f32.mrf.mxu1 }
 0x220   : > { %v2831_v51 = vadd.f32 %v2830_v47, %v2829_v46 }
 0x221   : > { %v2832_v55 = vpop.f32.mrf.mxu1 }
 0x222   : > { %v2156_v56 = vadd.f32 %v2831_v51, %v2767_v48  ;;  %v2801_v51 = vpop.f32.mrf.mxu0 }
 0x223   : > { %v2833_v60 = vpop.f32.mrf.mxu1 }
 0x224   : > { %v2834_v62 = vadd.f32 %v2833_v60, %v2832_v55  ;;  %v2276_v3 = vadd.f32 %v4084_v57, %v2156_v56 }
 0x225   : > { %v2835_v0 = vpop.f32.mrf.mxu1 }
 0x226   : > { %v2159_v6 = vadd.f32 %v2834_v62, %v2770_v61  ;;  %v2292_v16 = vmax.f32 %v2276_v3, 0.0 }
 0x227   : > { %v2836_v7 = vpop.f32.mrf.mxu1 }
 0x228   : > { %v2277_v9 = vadd.f32 %v4084_v57, %v2159_v6  ;;  %v2837_v10 = vadd.f32 %v2836_v7, %v2835_v0  ;;  %v2802_v0 = vpop.f32.mrf.mxu0 }
 0x229   : > { %v2838_v54 = vpop.f32.mrf.mxu1  ;;  %v2803_v44 = vadd.f32 %v2802_v0, %v2801_v51 }
 0x22a   : > { %v2293_v17 = vmax.f32 %v2277_v9, 0.0  ;;  %v2164_v23 = vadd.f32 %v2837_v10, %v2773_v8  ;;  %v2794_v8 = vadd.f32 %v2793_v53, %v4086_v63  ;;  %v2800_v63 = vadd.f32 %v2799_v29, %v2798_v21 }
 0x22b   : > { %v2839_v24 = vpop.f32.mrf.mxu1 }
 0x22c   : > { %v2840_v37 = vadd.f32 %v2839_v24, %v2838_v54  ;;  %v2308_v43 = vpack.c.bf16 %v2293_v17, %v2292_v16  ;;  %v2278_v59 = vadd.f32 %v4084_v57, %v2164_v23  ;;  %v2804_v54 = vpop.f32.mrf.mxu0 }
 0x22d   : > { %v2841_v58 = vpop.f32.mrf.mxu1 }
 0x22e   : > { %v2167_v1 = vadd.f32 %v2840_v37, %v2776_v36  ;;  %2909 = vmatprep.mubr.bf16.mxu0 %v2308_v43  ;;  %v2294_v26 = vmax.f32 %v2278_v59, 0.0  ;;  %v2805_v37 = vpop.f32.mrf.mxu0 }
 0x22f   : > { %v2842_v2 = vpop.f32.mrf.mxu1  ;;  %v2806_v21 = vadd.f32 %v2805_v37, %v2804_v54 }
 0x230   : > { %v2279_v18 = vadd.f32 %v4084_v57, %v2167_v1  ;;  %v2843_v14 = vadd.f32 %v2842_v2, %v2841_v58 }
 0x231   : > { %v2844_v25 = vpop.f32.mrf.mxu1 }
 0x232   : > { %v2295_v4 = vmax.f32 %v2279_v18, 0.0  ;;  %v2172_v49 = vadd.f32 %v2843_v14, %v2779_v11  ;;  %v2807_v18 = vpop.f32.mrf.mxu0 }
 0x233   : > { %v2845_v40 = vpop.f32.mrf.mxu1 }
 0x234   : > { %v2309_v50 = vpack.c.bf16 %v2295_v4, %v2294_v26  ;;  %v2846_v5 = vadd.f32 %v2845_v40, %v2844_v25  ;;  %v2280_v30 = vadd.f32 %v4084_v57, %v2172_v49  ;;  %v2808_v40 = vpop.f32.mrf.mxu0 }
 0x235   : > { %v2847_v12 = vpop.f32.mrf.mxu1 }
 0x236   : > { %v2175_v13 = vadd.f32 %v2846_v5, %v2782_v41  ;;  %2910 = vmatmul.mubr.bf16.vlgmr.msra.gmra.mxu0 %v2309_v50  ;;  %v2296_v32 = vmax.f32 %v2280_v30, 0.0 }
 0x237   : > { %v2848_v19 = vpop.f32.mrf.mxu1 }
 0x238   : > { %v2281_v22 = vadd.f32 %v4084_v57, %v2175_v13  ;;  %v2849_v27 = vadd.f32 %v2848_v19, %v2847_v12 }
 0x239   : > { %v2850_v31 = vpop.f32.mrf.mxu1 }
 0x23a   : > { %v2297_v33 = vmax.f32 %v2281_v22, 0.0  ;;  %v2180_v46 = vadd.f32 %v2849_v27, %v2785_v20  ;;  %v2810_v20 = vpop.f32.mrf.mxu0 }
 0x23b   : > { %v2851_v47 = vpop.f32.mrf.mxu1 }
 0x23c   : > { %v2852_v28 = vadd.f32 %v2851_v47, %v2850_v31  ;;  %v2310_v48 = vpack.c.bf16 %v2297_v33, %v2296_v32  ;;  %v2282_v56 = vadd.f32 %v4084_v57, %v2180_v46  ;;  %v2809_v32 = vadd.f32 %v2808_v40, %v2807_v18  ;;  %v2811_v47 = vpop.f32.mrf.mxu0 }
 0x23d   : > { %v2853_v55 = vpop.f32.mrf.mxu1 }
 0x23e   : > { %v2183_v60 = vadd.f32 %v2852_v28, %v2788_v34  ;;  %2913 = vmatprep.mubr.bf16.mxu0 %v2310_v48  ;;  %v2298_v6 = vmax.f32 %v2282_v56, 0.0  ;;  %v2812_v56 = vadd.f32 %v2811_v47, %v2810_v20 }
 0x23f   : > { %v2854_v35 = vpop.f32.mrf.mxu1 }
 0x240   : > { %v2283_v61 = vadd.f32 %v4084_v57, %v2183_v60  ;;  %v2855_v62 = vadd.f32 %v2854_v35, %v2853_v55 }
 0x241   : > { %v2856_v3 = vpop.f32.mrf.mxu1 }
 0x242   : > { %v2299_v7 = vmax.f32 %v2283_v61, 0.0  ;;  %v2188_v39 = vadd.f32 %v2855_v62, %v2791_v38 }
 0x243   : > { %v2857_v42 = vpop.f32.mrf.mxu1 }
 0x244   : > { %v2858_v9 = vadd.f32 %v2857_v42, %v2856_v3  ;;  %v2311_v10 = vpack.c.bf16 %v2299_v7, %v2298_v6  ;;  %v2284_v17 = vadd.f32 %v4084_v57, %v2188_v39  ;;  %v2737_v7 = vld [vmem:[%s4165_s6] ss:$0 sm:$0xff] }
 0x245   : > { %v2859_v16 = vpop.f32.mrf.mxu1 }
 0x246   : > { %v2191_v23 = vadd.f32 %v2858_v9, %v2794_v8  ;;  %2914 = vmatmul.mubr.bf16.gmra.mxu0 %v2311_v10  ;;  %v2300_v58 = vmax.f32 %v2284_v17, 0.0 }
 0x247   : > { %v2860_v45 = vpop.f32.mrf.mxu1 }
 0x248   : > { %v2285_v24 = vadd.f32 %v4084_v57, %v2191_v23  ;;  %v2861_v36 = vadd.f32 %v2860_v45, %v2859_v16 }
 0x249   : > { %v2862_v43 = vpop.f32.mrf.mxu1 }
 0x24a   : > { %v2301_v59 = vmax.f32 %v2285_v24, 0.0  ;;  %v2196_v1 = vadd.f32 %v2861_v36, %v2797_v52 }
 0x24b   : > { %v2863_v2 = vpop.f32.mrf.mxu1 }
 0x24c   : > { %v2864_v53 = vadd.f32 %v2863_v2, %v2862_v43  ;;  %v2312_v11 = vpack.c.bf16 %v2301_v59, %v2300_v58  ;;  %v2286_v25 = vadd.f32 %v4084_v57, %v2196_v1 }
 0x24d   : > { %v2865_v14 = vpop.f32.mrf.mxu1 }
 0x24e   : > { %v2199_v26 = vadd.f32 %v2864_v53, %v2800_v63  ;;  %2917 = vmatprep.mubr.bf16.mxu1 %v2312_v11  ;;  %v2302_v50 = vmax.f32 %v2286_v25, 0.0 }
 0x24f   : > { %v2866_v4 = vpop.f32.mrf.mxu1 }
 0x250   : > { %v2287_v15 = vadd.f32 %v4084_v57, %v2199_v26  ;;  %v2867_v49 = vadd.f32 %v2866_v4, %v2865_v14 }
 0x251   : > { %v2868_v41 = vpop.f32.mrf.mxu1 }
 0x252   : > { %v2303_v5 = vmax.f32 %v2287_v15, 0.0  ;;  %v2204_v12 = vadd.f32 %v2867_v49, %v2803_v44 }
 0x253   : > { %v2869_v30 = vpop.f32.mrf.mxu1 }
 0x254   : > { %v2313_v13 = vpack.c.bf16 %v2303_v5, %v2302_v50  ;;  %v2870_v19 = vadd.f32 %v2869_v30, %v2868_v41  ;;  %v2288_v27 = vadd.f32 %v4084_v57, %v2204_v12 }
 0x255   : > { %v2871_v22 = vpop.f32.mrf.mxu1 }
 0x256   : > { %v2207_v29 = vadd.f32 %v2870_v19, %v2806_v21  ;;  %2918 = vmatmul.mubr.bf16.vlgmr.msra.gmra.mxu1 %v2313_v13  ;;  %v2304_v28 = vmax.f32 %v2288_v27, 0.0 }
 0x257   : > { %v2872_v31 = vpop.f32.mrf.mxu1 }
 0x258   : > { %v2289_v33 = vadd.f32 %v4084_v57, %v2207_v29  ;;  %v2873_v46 = vadd.f32 %v2872_v31, %v2871_v22 }
 0x259   : > { %v2874_v34 = vpop.f32.mrf.mxu1 }
 0x25a   : > { %v2305_v48 = vmax.f32 %v2289_v33, 0.0  ;;  %v2212_v51 = vadd.f32 %v2873_v46, %v2809_v32 }
 0x25b   : > { %v2875_v55 = vpop.f32.mrf.mxu1 }
 0x25c   : > { %v2876_v60 = vadd.f32 %v2875_v55, %v2874_v34  ;;  %v2314_v35 = vpack.c.bf16 %v2305_v48, %v2304_v28  ;;  %v2290_v38 = vadd.f32 %v4084_v57, %v2212_v51 }
 0x25e   : > { %v2215_v61 = vadd.f32 %v2876_v60, %v2812_v56  ;;  %2921 = vmatprep.mubr.bf16.mxu1 %v2314_v35  ;;  %v2306_v0 = vmax.f32 %v2290_v38, 0.0 }
 0x260   : > { %v2291_v62 = vadd.f32 %v4084_v57, %v2215_v61 }
 0x262   : > { %v2307_v3 = vmax.f32 %v2291_v62, 0.0 }
 0x264   : > { %v2315_v6 = vpack.c.bf16 %v2307_v3, %v2306_v0 }
 0x266   : > { %2922 = vmatmul.mubr.bf16.gmra.mxu1 %v2315_v6 }
 0x2f6   : > { %v2911_v39 = vpop.f32.mrf.mxu0 }
 0x2f7   : > { %v2430_v57 = vadd.f32 %v2911_v39, %v2737_v7 }
 0x2f8   : > { %v2421_v42 = vpop.f32.mrf.mxu0 }
 0x2f9   : > { %2487 = vst.msk [vmem:[%s4116_s19 + $0x10] sm:$0xff] %vm2484_vm0, %v2430_v57  ;;  %v2422_v8 = vadd.f32 %v2737_v7, %v2421_v42 }
 0x2fa   : > { %v2912_v9 = vpop.f32.mrf.mxu0 }
 0x2fb   : > { %2485 = vst.msk [vmem:[%s4116_s19] sm:$0xff] %vm2484_vm0, %v2422_v8  ;;  %v2433_v10 = vadd.f32 %v2912_v9, %v2737_v7 }
 0x2fc   : > { %v2424_v54 = vpop.f32.mrf.mxu0 }
 0x2fd   : > { %2488 = vst.msk [vmem:[%s4116_s19 + $0x18] sm:$0xff] %vm2484_vm0, %v2433_v10  ;;  %v2425_v16 = vadd.f32 %v2737_v7, %v2424_v54 }
 0x2ff   : > { %2486 = vst.msk [vmem:[%s4116_s19 + $0x8] sm:$0xff] %vm2484_vm0, %v2425_v16 }
 0x306   : > { %v2915_v17 = vpop.f32.mrf.mxu0 }
 0x307   : > { %v2446_v23 = vadd.f32 %v2915_v17, %v2737_v7 }
 0x308   : > { %v2437_v45 = vpop.f32.mrf.mxu0 }
 0x309   : > { %2491 = vst.msk [vmem:[%s4116_s19 + $0x30] sm:$0xff] %vm2484_vm0, %v2446_v23  ;;  %v2438_v52 = vadd.f32 %v2737_v7, %v2437_v45 }
 0x30a   : > { %v2916_v24 = vpop.f32.mrf.mxu0 }
 0x30b   : > { %2489 = vst.msk [vmem:[%s4116_s19 + $0x20] sm:$0xff] %vm2484_vm0, %v2438_v52  ;;  %v2449_v36 = vadd.f32 %v2916_v24, %v2737_v7 }
 0x30c   : > { %v2440_v37 = vpop.f32.mrf.mxu0 }
 0x30d   : > { %2492 = vst.msk [vmem:[%s4116_s19 + $0x38] sm:$0xff] %vm2484_vm0, %v2449_v36  ;;  %v2441_v43 = vadd.f32 %v2737_v7, %v2440_v37 }
 0x30f   : > { %2490 = vst.msk [vmem:[%s4116_s19 + $0x28] sm:$0xff] %vm2484_vm0, %v2441_v43 }
 0x316   : > { %v2919_v58 = vpop.f32.mrf.mxu1 }
 0x317   : > { %v2462_v59 = vadd.f32 %v2919_v58, %v2737_v7 }
 0x318   : > { %v2453_v1 = vpop.f32.mrf.mxu1 }
 0x319   : > { %2495 = vst.msk [vmem:[%s4116_s19 + $0x50] sm:$0xff] %vm2484_vm0, %v2462_v59  ;;  %v2454_v2 = vadd.f32 %v2737_v7, %v2453_v1 }
 0x31a   : > { %v2920_v63 = vpop.f32.mrf.mxu1 }
 0x31b   : > { %2493 = vst.msk [vmem:[%s4116_s19 + $0x40] sm:$0xff] %vm2484_vm0, %v2454_v2  ;;  %v2465_v53 = vadd.f32 %v2920_v63, %v2737_v7 }
 0x31c   : > { %v2456_v11 = vpop.f32.mrf.mxu1 }
 0x31d   : > { %2496 = vst.msk [vmem:[%s4116_s19 + $0x58] sm:$0xff] %vm2484_vm0, %v2465_v53  ;;  %v2457_v18 = vadd.f32 %v2737_v7, %v2456_v11 }
 0x31f   : > { %2494 = vst.msk [vmem:[%s4116_s19 + $0x48] sm:$0xff] %vm2484_vm0, %v2457_v18 }
 0x326   : > { %v2923_v14 = vpop.f32.mrf.mxu1 }
 0x327   : > { %v2478_v25 = vadd.f32 %v2923_v14, %v2737_v7 }
 0x328   : > { %v2469_v26 = vpop.f32.mrf.mxu1 }
 0x329   : > { %2499 = vst.msk [vmem:[%s4116_s19 + $0x70] sm:$0xff] %vm2484_vm0, %v2478_v25  ;;  %v2470_v4 = vadd.f32 %v2737_v7, %v2469_v26 }
 0x32a   : > { %v2924_v44 = vpop.f32.mrf.mxu1 }
 0x32b   : > { %2497 = vst.msk [vmem:[%s4116_s19 + $0x60] sm:$0xff] %vm2484_vm0, %v2470_v4  ;;  %v2481_v15 = vadd.f32 %v2924_v44, %v2737_v7 }
 0x32c   : > { %v2472_v49 = vpop.f32.mrf.mxu1 }
 0x32d   : > { %2500 = vst.msk [vmem:[%s4116_s19 + $0x78] sm:$0xff] %vm2484_vm0, %v2481_v15  ;;  %v2473_v40 = vadd.f32 %v2737_v7, %v2472_v49 }
 0x32f   : > { %2498 = vst.msk [vmem:[%s4116_s19 + $0x68] sm:$0xff] %vm2484_vm0, %v2473_v40 }
 0x330 PF: > { %s17_s26 = sadd.s32 1, %s3219_s26   ;;  %s4167_s24 = smov %s3215_s25 }
 0x331   : > { %p14_p5 = scmp.ge.s32.totalorder %s17_s26, 4   ;;  %s4168_s25 = smov %s4170_s27 }
 0x333   :  { %16 = sbr.rel (!%p14_p5) target bundleno = 2 (0x2), region = 86 }

</bundles_post_ra>
